<compile_context>
chip_gen: v5e
topology: v5e:2x2
jax: 0.10.0
libtpu: 0.0.40
codegen_flags: <defaults>
</compile_context>

<pallas_src>
import math
import functools

import jax
import jax.numpy as jnp
from jax.experimental import pallas as pl
from jax.experimental.pallas import tpu as pltpu


# ------------------------------ Pallas kernels -------------------------------

_PE_PARAMS_PER_LAYER = 12   # wqkv, bqkv, wo, bo, ln1_g, ln1_b, w1, b1, w2, b2, ln2_g, ln2_b
_GT_PARAMS_PER_LAYER = 12   # wqkv, we, wo, bo, bn1_s, bn1_b, w1, b1, w2, b2, bn2_s, bn2_b


def _pe_stack_kernel(*refs, num_layers):
    """linear_A + num_layers x nn.TransformerEncoderLayer (post-norm, nhead=1,
    relu, eval) + masked (nansum) reduction over the eigenvector axis, fused."""
    out_ref = refs[-1]
    pe_ref, maskf_ref, wa_ref, ba_ref = refs[:4]
    layer_refs = refs[4:-1]

    N, K, _ = pe_ref.shape
    E = wa_ref.shape[1]
    inv_sqrt_e = 1.0 / math.sqrt(E)
    inv_e = 1.0 / E

    mask = maskf_ref[...]                                  # [N, K]; 1.0 == padded key
    neg = mask[:, None, :] * (-1e30)                       # hoisted additive key mask

    # linear_A: tiny 2 -> E projection (fused into the kernel)
    pe2 = pe_ref[...].reshape(N * K, 2).astype(jnp.bfloat16)
    x2 = (jnp.dot(pe2, wa_ref[...], preferred_element_type=jnp.float32)
          + ba_ref[...])                                   # [N*K, E] f32

    for li in range(num_layers):
        (wqkv, bqkv, wo, bo, g1, be1,
         w1, b1, w2, b2, g2, be2) = layer_refs[li * _PE_PARAMS_PER_LAYER:
                                               (li + 1) * _PE_PARAMS_PER_LAYER]

        # fused Q|K|V projection: one MXU pass instead of three
        qkv = (jnp.dot(x2.astype(jnp.bfloat16), wqkv[...],
                       preferred_element_type=jnp.float32) + bqkv[...])   # [N*K, 3E]
        q = qkv[:, 0:E].reshape(N, K, E).astype(jnp.bfloat16)
        k = qkv[:, E:2 * E].reshape(N, K, E).astype(jnp.bfloat16)
        v = qkv[:, 2 * E:3 * E].reshape(N, K, E).astype(jnp.bfloat16)

        scores = jnp.einsum('nqe,nke->nqk', q, k,
                            preferred_element_type=jnp.float32) * inv_sqrt_e
        scores = scores + neg                              # key_padding_mask
        m = jnp.max(scores, axis=-1, keepdims=True)
        p = jnp.exp(scores - m)
        attn = p * pl.reciprocal(jnp.sum(p, axis=-1, keepdims=True), approx=True)
        ctx = jnp.einsum('nqk,nke->nqe', attn.astype(jnp.bfloat16), v,
                         preferred_element_type=jnp.float32)              # [N, K, E]

        ao = (jnp.dot(ctx.reshape(N * K, E).astype(jnp.bfloat16), wo[...],
                      preferred_element_type=jnp.float32) + bo[...])
        y = x2 + ao                                        # residual 1
        mu = jnp.sum(y, axis=-1, keepdims=True) * inv_e
        var = jnp.sum((y - mu) ** 2, axis=-1, keepdims=True) * inv_e
        y = (y - mu) * jax.lax.rsqrt(var + 1e-5) * g1[...] + be1[...]      # LayerNorm1

        f = jnp.maximum(jnp.dot(y.astype(jnp.bfloat16), w1[...],
                                preferred_element_type=jnp.float32) + b1[...], 0.0)
        f = jnp.dot(f.astype(jnp.bfloat16), w2[...],
                    preferred_element_type=jnp.float32) + b2[...]
        z = y + f                                          # residual 2
        mu = jnp.sum(z, axis=-1, keepdims=True) * inv_e
        var = jnp.sum((z - mu) ** 2, axis=-1, keepdims=True) * inv_e
        x2 = (z - mu) * jax.lax.rsqrt(var + 1e-5) * g2[...] + be2[...]     # LayerNorm2

    # PosEnc[mask] = nan; nansum over eigenvector axis == masked sum.
    # NOTE: fully-masked query rows get a uniform softmax instead of NaN; the
    # masked sum below removes those positions, matching the reference output.
    x3 = x2.reshape(N, K, E)
    wsum = (1.0 - mask)[:, None, :]                        # [N, 1, K]
    pos = jnp.einsum('nqk,nke->nqe', wsum, x3,
                     preferred_element_type=jnp.float32)   # [N, 1, E]
    out_ref[...] = pos.reshape(N, E)                       # single lane-dense store


def _gt_stack_kernel(*refs, num_layers, num_heads):
    """num_layers x GraphTransformerLayer (SAN edge-conditioned attention + O_h
    + folded BN + FFN + folded BN), fused into one kernel; e stays resident."""
    out_ref = refs[-1]
    h_ref, ef_ref, adj_ref = refs[:3]
    layer_refs = refs[3:-1]

    N = h_ref.shape[0]
    h = h_ref[...]                                         # [N, hidden] f32
    ef = ef_ref[...]                                       # [N*N, hidden] bf16 (row = dst*N+src)
    adj = adj_ref[...]                                     # [N, N] f32 (dst, src)

    for li in range(num_layers):
        (wqkv, we, wo, bo, bn1s, bn1b,
         w1, b1, w2, b2, bn2s, bn2b) = layer_refs[li * _GT_PARAMS_PER_LAYER:
                                                  (li + 1) * _GT_PARAMS_PER_LAYER]
        out_dim = we.shape[1]
        D = out_dim // num_heads
        inv_sqrt_d = 1.0 / math.sqrt(D)

        h_bf = h.astype(jnp.bfloat16)
        qkv = jnp.dot(h_bf, wqkv[...], preferred_element_type=jnp.float32)  # [N, 3*out]
        e = jnp.dot(ef, we[...], preferred_element_type=jnp.float32)        # [N*N, out]

        q = qkv[:, 0:out_dim]
        k = qkv[:, out_dim:2 * out_dim]
        v = qkv[:, 2 * out_dim:3 * out_dim]

        # Per-head attention; results kept in registers and concatenated once
        # (no column-sliced scratch stores).
        parts = []
        for hd in range(num_heads):
            s, t = hd * D, (hd + 1) * D
            qh, kh, vh = q[:, s:t], k[:, s:t], v[:, s:t]       # [N, D]
            eh = e[:, s:t].reshape(N, N, D)                    # [dst, src, D]
            # score = (K_src * Q_dst / sqrt(D)) * E, summed over D, clamp, exp
            sc = jnp.sum(qh[:, None, :] * kh[None, :, :] * eh, axis=-1) * inv_sqrt_d
            soft = adj * jnp.exp(jnp.clip(sc, -5.0, 5.0))      # [N(dst), N(src)]
            wv = jnp.dot(soft.astype(jnp.bfloat16), vh.astype(jnp.bfloat16),
                         preferred_element_type=jnp.float32)   # sum_src soft*V_src
            zh = jnp.sum(soft, axis=1, keepdims=True)          # [N, 1]
            parts.append(wv * pl.reciprocal(zh + 1e-6, approx=True))
        h_attn = jnp.concatenate(parts, axis=-1)               # [N, H*D]

        h2 = jnp.dot(h_attn.astype(jnp.bfloat16), wo[...],
                     preferred_element_type=jnp.float32) + bo[...]
        h2 = h + h2                                        # residual 1 (in_dim == out_dim)
        h2 = h2 * bn1s[...] + bn1b[...]                    # BatchNorm1d (eval, folded)
        f = jnp.maximum(jnp.dot(h2.astype(jnp.bfloat16), w1[...],
                                preferred_element_type=jnp.float32) + b1[...], 0.0)
        f = jnp.dot(f.astype(jnp.bfloat16), w2[...],
                    preferred_element_type=jnp.float32) + b2[...]
        h3 = h2 + f                                        # residual 2
        h = h3 * bn2s[...] + bn2b[...]                     # BatchNorm1d (eval, folded)

    out_ref[...] = h                                       # single store


# ------------------------------ wrappers --------------------------------------

def pe_stack(pe, maskf, params):
    N, K, _ = pe.shape
    E = params['W_A'].shape[1]
    args = [pe, maskf, params['W_A'], params['b_A']]
    for lp in params['pe_layers']:
        args += [lp['wqkv'], lp['bqkv'], lp['wo'], lp['bo'],
                 lp['ln1_g'], lp['ln1_b'], lp['w1'], lp['b1'],
                 lp['w2'], lp['b2'], lp['ln2_g'], lp['ln2_b']]
    kern = functools.partial(_pe_stack_kernel, num_layers=len(params['pe_layers']))
    return pl.pallas_call(
        kern,
        out_shape=jax.ShapeDtypeStruct((N, E), jnp.float32),
        in_specs=[pl.BlockSpec(memory_space=pltpu.MemorySpace.VMEM)] * len(args),
        out_specs=pl.BlockSpec(memory_space=pltpu.MemorySpace.VMEM),
        compiler_params=pltpu.CompilerParams(vmem_limit_bytes=32 * 1024 * 1024),
    )(*args)


def gt_stack(h, e_flat, adj, params, *, num_heads):
    N = h.shape[0]
    layers = params['gt_layers']
    out_dim = layers[-1]['wo'].shape[1]
    args = [h, e_flat, adj]
    for lp in layers:
        args += [lp['wqkv'], lp['we'], lp['wo'], lp['bo'],
                 lp['bn1_scale'], lp['bn1_shift'],
                 lp['w1'], lp['b1'], lp['w2'], lp['b2'],
                 lp['bn2_scale'], lp['bn2_shift']]
    kern = functools.partial(_gt_stack_kernel, num_layers=len(layers),
                             num_heads=num_heads)
    return pl.pallas_call(
        kern,
        out_shape=jax.ShapeDtypeStruct((N, out_dim), jnp.float32),
        in_specs=[pl.BlockSpec(memory_space=pltpu.MemorySpace.VMEM)] * len(args),
        out_specs=pl.BlockSpec(memory_space=pltpu.MemorySpace.VMEM),
        compiler_params=pltpu.CompilerParams(vmem_limit_bytes=32 * 1024 * 1024),
    )(*args)


# ----------------------------- params & forward ------------------------------

def init_params(key, cfg):
    keys = iter(jax.random.split(key, 512))

    def nrm(shape, scale=0.1):
        return (scale * jax.random.normal(next(keys), shape)).astype(jnp.float32)

    def bf16(x):  # matmul weights stored bf16 (MXU operands); accumulation stays f32
        return x.astype(jnp.bfloat16)

    p = {}
    emb_h_dim = cfg['GT_hidden_dim'] - cfg['LPE_dim']
    # AtomEncoder / BondEncoder: one embedding table per categorical feature column.
    p['atom_emb'] = [nrm((cfg['node_vocab'], emb_h_dim)) for _ in range(cfg['n_node_feats'])]
    p['bond_emb'] = [nrm((cfg['edge_vocab'], cfg['GT_hidden_dim'])) for _ in range(cfg['n_edge_feats'])]

    E, FF = cfg['LPE_dim'], cfg['LPE_ffn_dim']
    p['W_A'] = bf16(nrm((2, E)))
    p['b_A'] = nrm((1, E))
    p['pe_layers'] = []
    for _ in range(cfg['LPE_layers']):
        p['pe_layers'].append(dict(
            wqkv=bf16(nrm((E, 3 * E))), bqkv=nrm((1, 3 * E), 0.01),   # fused Q|K|V
            wo=bf16(nrm((E, E))), bo=nrm((1, E), 0.01),
            ln1_g=1.0 + nrm((1, E), 0.01), ln1_b=nrm((1, E), 0.01),
            w1=bf16(nrm((E, FF), 0.05)), b1=nrm((1, FF), 0.01),
            w2=bf16(nrm((FF, E), 0.05)), b2=nrm((1, E), 0.01),
            ln2_g=1.0 + nrm((1, E), 0.01), ln2_b=nrm((1, E), 0.01)))

    H = cfg['GT_hidden_dim']
    p['gt_layers'] = []
    for li in range(cfg['GT_layers']):
        out_dim = cfg['GT_out_dim'] if li == cfg['GT_layers'] - 1 else H

        def bn(dim):  # fold BatchNorm1d eval-mode running stats into scale/shift
            gamma = 1.0 + nrm((1, dim), 0.01)
            beta = nrm((1, dim), 0.01)
            rmean = nrm((1, dim), 0.01)
            rvar = 1.0 + jnp.abs(nrm((1, dim), 0.01))
            scale = gamma * jax.lax.rsqrt(rvar + 1e-5)
            return scale, beta - rmean * scale

        bn1s, bn1b = bn(out_dim)
        bn2s, bn2b = bn(out_dim)
        p['gt_layers'].append(dict(
            wqkv=bf16(nrm((H, 3 * out_dim))),                  # fused Q|K|V, use_bias=False
            we=bf16(nrm((H, out_dim))),
            wo=bf16(nrm((out_dim, out_dim))), bo=nrm((1, out_dim), 0.01),
            bn1_scale=bn1s, bn1_shift=bn1b,
            w1=bf16(nrm((out_dim, 2 * out_dim))), b1=nrm((1, 2 * out_dim), 0.01),
            w2=bf16(nrm((2 * out_dim, out_dim))), b2=nrm((1, out_dim), 0.01),
            bn2_scale=bn2s, bn2_shift=bn2b))
    return p


def san_nodelpe_forward(params, cfg, node_feat, edge_feat, src, dst, pos_enc):
    # embedding_h / embedding_e_real (OGB-style: sum of per-column embeddings) — glue.
    h = sum(params['atom_emb'][i][node_feat[:, i]] for i in range(node_feat.shape[1]))
    e = sum(params['bond_emb'][i][edge_feat[:, i]] for i in range(edge_feat.shape[1]))

    N = h.shape[0]
    empty_mask = jnp.isnan(pos_enc)                          # [N, K, 2]
    pe = jnp.where(empty_mask, 0.0, pos_enc)                 # PosEnc[empty_mask] = 0
    maskf = empty_mask[:, :, 0].astype(jnp.float32)          # [N, K] key-padding mask

    # Fused Pallas kernel: linear_A + all LPE encoder layers + masked sum.
    pos = pe_stack(pe, maskf, params)                        # [N, LPE_dim]

    h = jnp.concatenate([h, pos], axis=1)                    # [N, GT_hidden]
    # in_feat_dropout: eval mode -> identity

    # Densify DGL edge data: e_dense[dst, src] = bond embedding of edge src->dst.
    # TODO(synk): for large sparse graphs, feed (src, dst, e) via scalar prefetch and
    # gather per-dst-tile instead of materialising the O(N^2) table.
    hidden = e.shape[1]
    e_dense = jnp.zeros((N, N, hidden), jnp.float32).at[dst, src].set(e)
    adj = jnp.zeros((N, N), jnp.float32).at[dst, src].set(1.0)
    e_flat = e_dense.reshape(N * N, hidden).astype(jnp.bfloat16)

    # Fused Pallas kernel: all GraphTransformer layers in one call; e stays in VMEM.
    h = gt_stack(h, e_flat, adj, params, num_heads=cfg['GT_n_heads'])
    return h


# ----------------------------------- main ------------------------------------

if __name__ == "__main__":
    cfg = dict(GT_hidden_dim=32, GT_n_heads=4, GT_out_dim=32, GT_layers=2,
               LPE_dim=8, LPE_n_heads=1, LPE_layers=1, LPE_ffn_dim=2048,
               node_vocab=16, n_node_feats=2, edge_vocab=8, n_edge_feats=2)

    key = jax.random.PRNGKey(0)
    kp, kd = jax.random.split(key)
    params = init_params(kp, cfg)

    N, K, n_edges = 8, 4, 16
    k1, k2, k3 = jax.random.split(kd, 3)
    node_feat = jax.random.randint(k1, (N, cfg['n_node_feats']), 0, cfg['node_vocab'])
    edge_feat = jax.random.randint(k2, (n_edges, cfg['n_edge_feats']), 0, cfg['edge_vocab'])
    # bidirectional 8-node ring (16 directed edges)
    src = jnp.array([0, 1, 2, 3, 4, 5, 6, 7, 1, 2, 3, 4, 5, 6, 7, 0], jnp.int32)
    dst = jnp.array([1, 2, 3, 4, 5, 6, 7, 0, 0, 1, 2, 3, 4, 5, 6, 7], jnp.int32)
    pos_enc = jax.random.normal(k3, (N, K, 2), jnp.float32)
    # NaN-padded eigenvectors for some nodes (as in the real LPE datasets)
    pos_enc = pos_enc.at[5, 3, :].set(jnp.nan)
    pos_enc = pos_enc.at[6, 3, :].set(jnp.nan)
    pos_enc = pos_enc.at[7, 2:, :].set(jnp.nan)

    out = san_nodelpe_forward(params, cfg, node_feat, edge_feat, src, dst, pos_enc)
    out = jax.block_until_ready(out)
    assert out.shape == (N, cfg['GT_out_dim'])
    assert bool(jnp.all(jnp.isfinite(out)))
    print("KERNEL_OK")
</pallas_src>

<mosaic_0001>
module attributes {stable_mosaic.version = 11 : i64} {
  func.func @_pe_stack_kernel(%arg0: memref<8x4x2xf32, #tpu.memory_space<vmem>>, %arg1: memref<8x4xf32, #tpu.memory_space<vmem>>, %arg2: memref<2x8xbf16, #tpu.memory_space<vmem>>, %arg3: memref<1x8xf32, #tpu.memory_space<vmem>>, %arg4: memref<8x24xbf16, #tpu.memory_space<vmem>>, %arg5: memref<1x24xf32, #tpu.memory_space<vmem>>, %arg6: memref<8x8xbf16, #tpu.memory_space<vmem>>, %arg7: memref<1x8xf32, #tpu.memory_space<vmem>>, %arg8: memref<1x8xf32, #tpu.memory_space<vmem>>, %arg9: memref<1x8xf32, #tpu.memory_space<vmem>>, %arg10: memref<8x2048xbf16, #tpu.memory_space<vmem>>, %arg11: memref<1x2048xf32, #tpu.memory_space<vmem>>, %arg12: memref<2048x8xbf16, #tpu.memory_space<vmem>>, %arg13: memref<1x8xf32, #tpu.memory_space<vmem>>, %arg14: memref<1x8xf32, #tpu.memory_space<vmem>>, %arg15: memref<1x8xf32, #tpu.memory_space<vmem>>, %arg16: memref<8x8xf32, #tpu.memory_space<vmem>>) attributes {dimension_semantics = [], scalar_prefetch = 0 : i64, scratch_operands = 0 : i64, tpu.core_type = #tpu.core_type<tc>} {
    %c0 = arith.constant 0 : index
    %c0_0 = arith.constant 0 : index
    %0 = vector.load %arg1[%c0, %c0_0] : memref<8x4xf32, #tpu.memory_space<vmem>>, vector<8x4xf32>
    %1 = vector.shape_cast %0 : vector<8x4xf32> to vector<8x1x4xf32>
    %cst = arith.constant -1.000000e+30 : f32
    %2 = vector.broadcast %cst : f32 to vector<8x1x4xf32>
    %3 = arith.mulf %1, %2 : vector<8x1x4xf32>
    %c0_1 = arith.constant 0 : index
    %c0_2 = arith.constant 0 : index
    %c0_3 = arith.constant 0 : index
    %4 = vector.load %arg0[%c0_1, %c0_2, %c0_3] : memref<8x4x2xf32, #tpu.memory_space<vmem>>, vector<8x4x2xf32>
    %5 = vector.shape_cast %4 : vector<8x4x2xf32> to vector<32x2xf32>
    %6 = arith.truncf %5 : vector<32x2xf32> to vector<32x2xbf16>
    %c0_4 = arith.constant 0 : index
    %c0_5 = arith.constant 0 : index
    %7 = vector.load %arg2[%c0_4, %c0_5] : memref<2x8xbf16, #tpu.memory_space<vmem>>, vector<2x8xbf16>
    %cst_6 = arith.constant dense<0.000000e+00> : vector<32x8xf32>
    %8 = tpu.matmul %6, %7, %cst_6 {dimension_numbers = #tpu.dot_dimension_numbers<[1], [0], [0], [1], [0, 0, 1, 1], [], []>} : vector<32x2xbf16>, vector<2x8xbf16>, vector<32x8xf32> -> vector<32x8xf32>
    %c0_7 = arith.constant 0 : index
    %c0_8 = arith.constant 0 : index
    %9 = vector.load %arg3[%c0_7, %c0_8] : memref<1x8xf32, #tpu.memory_space<vmem>>, vector<1x8xf32>
    %10 = vector.broadcast %9 : vector<1x8xf32> to vector<32x8xf32>
    %11 = arith.addf %8, %10 : vector<32x8xf32>
    %12 = arith.truncf %11 : vector<32x8xf32> to vector<32x8xbf16>
    %c0_9 = arith.constant 0 : index
    %c0_10 = arith.constant 0 : index
    %13 = vector.load %arg4[%c0_9, %c0_10] : memref<8x24xbf16, #tpu.memory_space<vmem>>, vector<8x24xbf16>
    %cst_11 = arith.constant dense<0.000000e+00> : vector<32x24xf32>
    %14 = tpu.matmul %12, %13, %cst_11 {dimension_numbers = #tpu.dot_dimension_numbers<[1], [0], [0], [1], [0, 0, 1, 1], [], []>} : vector<32x8xbf16>, vector<8x24xbf16>, vector<32x24xf32> -> vector<32x24xf32>
    %c0_12 = arith.constant 0 : index
    %c0_13 = arith.constant 0 : index
    %15 = vector.load %arg5[%c0_12, %c0_13] : memref<1x24xf32, #tpu.memory_space<vmem>>, vector<1x24xf32>
    %16 = vector.broadcast %15 : vector<1x24xf32> to vector<32x24xf32>
    %17 = arith.addf %14, %16 : vector<32x24xf32>
    %18 = vector.extract_strided_slice %17 {offsets = [0, 0], sizes = [32, 8], strides = [1, 1]} : vector<32x24xf32> to vector<32x8xf32>
    %19 = vector.shape_cast %18 : vector<32x8xf32> to vector<8x4x8xf32>
    %20 = arith.truncf %19 : vector<8x4x8xf32> to vector<8x4x8xbf16>
    %21 = vector.extract_strided_slice %17 {offsets = [0, 8], sizes = [32, 8], strides = [1, 1]} : vector<32x24xf32> to vector<32x8xf32>
    %22 = vector.shape_cast %21 : vector<32x8xf32> to vector<8x4x8xf32>
    %23 = arith.truncf %22 : vector<8x4x8xf32> to vector<8x4x8xbf16>
    %24 = vector.extract_strided_slice %17 {offsets = [0, 16], sizes = [32, 8], strides = [1, 1]} : vector<32x24xf32> to vector<32x8xf32>
    %25 = vector.shape_cast %24 : vector<32x8xf32> to vector<8x4x8xf32>
    %26 = arith.truncf %25 : vector<8x4x8xf32> to vector<8x4x8xbf16>
    "tpu.trace_start"() <{level = 10 : i32, message = "nqe,nke->nqk"}> : () -> ()
    %cst_14 = arith.constant dense<0.000000e+00> : vector<8x4x4xf32>
    %27 = tpu.matmul %20, %23, %cst_14 {dimension_numbers = #tpu.dot_dimension_numbers<[2], [2], [1], [1], [0, 0, 0, 1, 1, 1], [0], [0]>} : vector<8x4x8xbf16>, vector<8x4x8xbf16>, vector<8x4x4xf32> -> vector<8x4x4xf32>
    "tpu.trace_stop"() : () -> ()
    %cst_15 = arith.constant 0.353553385 : f32
    %28 = vector.broadcast %cst_15 : f32 to vector<8x4x4xf32>
    %29 = arith.mulf %27, %28 : vector<8x4x4xf32>
    %30 = vector.broadcast %3 : vector<8x1x4xf32> to vector<8x4x4xf32>
    %31 = arith.addf %29, %30 : vector<8x4x4xf32>
    %cst_16 = arith.constant dense<0xFF800000> : vector<8x4xf32>
    %32 = vector.multi_reduction <maximumf>, %31, %cst_16 [2] : vector<8x4x4xf32> to vector<8x4xf32>
    %33 = vector.shape_cast %32 : vector<8x4xf32> to vector<8x4x1xf32>
    %34 = vector.broadcast %33 : vector<8x4x1xf32> to vector<8x4x4xf32>
    %35 = arith.subf %31, %34 : vector<8x4x4xf32>
    %36 = math.exp %35 : vector<8x4x4xf32>
    %cst_17 = arith.constant dense<0.000000e+00> : vector<8x4xf32>
    %37 = vector.multi_reduction <add>, %36, %cst_17 [2] : vector<8x4x4xf32> to vector<8x4xf32>
    %38 = vector.shape_cast %37 : vector<8x4xf32> to vector<8x4x1xf32>
    %39 = tpu.reciprocal %38 {approx = true} : vector<8x4x1xf32> -> vector<8x4x1xf32>
    %40 = vector.broadcast %39 : vector<8x4x1xf32> to vector<8x4x4xf32>
    %41 = arith.mulf %36, %40 : vector<8x4x4xf32>
    %42 = arith.truncf %41 : vector<8x4x4xf32> to vector<8x4x4xbf16>
    "tpu.trace_start"() <{level = 10 : i32, message = "nqk,nke->nqe"}> : () -> ()
    %cst_18 = arith.constant dense<0.000000e+00> : vector<8x4x8xf32>
    %43 = tpu.matmul %42, %26, %cst_18 {dimension_numbers = #tpu.dot_dimension_numbers<[2], [1], [1], [2], [0, 0, 0, 1, 1, 2], [0], [0]>} : vector<8x4x4xbf16>, vector<8x4x8xbf16>, vector<8x4x8xf32> -> vector<8x4x8xf32>
    "tpu.trace_stop"() : () -> ()
    %44 = vector.shape_cast %43 : vector<8x4x8xf32> to vector<32x8xf32>
    %45 = arith.truncf %44 : vector<32x8xf32> to vector<32x8xbf16>
    %c0_19 = arith.constant 0 : index
    %c0_20 = arith.constant 0 : index
    %46 = vector.load %arg6[%c0_19, %c0_20] : memref<8x8xbf16, #tpu.memory_space<vmem>>, vector<8x8xbf16>
    %cst_21 = arith.constant dense<0.000000e+00> : vector<32x8xf32>
    %47 = tpu.matmul %45, %46, %cst_21 {dimension_numbers = #tpu.dot_dimension_numbers<[1], [0], [0], [1], [0, 0, 1, 1], [], []>} : vector<32x8xbf16>, vector<8x8xbf16>, vector<32x8xf32> -> vector<32x8xf32>
    %c0_22 = arith.constant 0 : index
    %c0_23 = arith.constant 0 : index
    %48 = vector.load %arg7[%c0_22, %c0_23] : memref<1x8xf32, #tpu.memory_space<vmem>>, vector<1x8xf32>
    %49 = vector.broadcast %48 : vector<1x8xf32> to vector<32x8xf32>
    %50 = arith.addf %47, %49 : vector<32x8xf32>
    %51 = arith.addf %11, %50 : vector<32x8xf32>
    %cst_24 = arith.constant dense<0.000000e+00> : vector<32xf32>
    %52 = vector.multi_reduction <add>, %51, %cst_24 [1] : vector<32x8xf32> to vector<32xf32>
    %53 = vector.shape_cast %52 : vector<32xf32> to vector<32x1xf32>
    %cst_25 = arith.constant 1.250000e-01 : f32
    %54 = vector.broadcast %cst_25 : f32 to vector<32x1xf32>
    %55 = arith.mulf %53, %54 : vector<32x1xf32>
    %56 = vector.broadcast %55 : vector<32x1xf32> to vector<32x8xf32>
    %57 = arith.subf %51, %56 : vector<32x8xf32>
    %58 = arith.mulf %57, %57 : vector<32x8xf32>
    %cst_26 = arith.constant dense<0.000000e+00> : vector<32xf32>
    %59 = vector.multi_reduction <add>, %58, %cst_26 [1] : vector<32x8xf32> to vector<32xf32>
    %60 = vector.shape_cast %59 : vector<32xf32> to vector<32x1xf32>
    %cst_27 = arith.constant 1.250000e-01 : f32
    %61 = vector.broadcast %cst_27 : f32 to vector<32x1xf32>
    %62 = arith.mulf %60, %61 : vector<32x1xf32>
    %63 = vector.broadcast %55 : vector<32x1xf32> to vector<32x8xf32>
    %64 = arith.subf %51, %63 : vector<32x8xf32>
    %cst_28 = arith.constant 9.99999974E-6 : f32
    %65 = vector.broadcast %cst_28 : f32 to vector<32x1xf32>
    %66 = arith.addf %62, %65 : vector<32x1xf32>
    %67 = math.rsqrt %66 : vector<32x1xf32>
    %68 = vector.broadcast %67 : vector<32x1xf32> to vector<32x8xf32>
    %69 = arith.mulf %64, %68 : vector<32x8xf32>
    %c0_29 = arith.constant 0 : index
    %c0_30 = arith.constant 0 : index
    %70 = vector.load %arg8[%c0_29, %c0_30] : memref<1x8xf32, #tpu.memory_space<vmem>>, vector<1x8xf32>
    %71 = vector.broadcast %70 : vector<1x8xf32> to vector<32x8xf32>
    %72 = arith.mulf %69, %71 : vector<32x8xf32>
    %c0_31 = arith.constant 0 : index
    %c0_32 = arith.constant 0 : index
    %73 = vector.load %arg9[%c0_31, %c0_32] : memref<1x8xf32, #tpu.memory_space<vmem>>, vector<1x8xf32>
    %74 = vector.broadcast %73 : vector<1x8xf32> to vector<32x8xf32>
    %75 = arith.addf %72, %74 : vector<32x8xf32>
    %76 = arith.truncf %75 : vector<32x8xf32> to vector<32x8xbf16>
    %c0_33 = arith.constant 0 : index
    %c0_34 = arith.constant 0 : index
    %77 = vector.load %arg10[%c0_33, %c0_34] : memref<8x2048xbf16, #tpu.memory_space<vmem>>, vector<8x2048xbf16>
    %cst_35 = arith.constant dense<0.000000e+00> : vector<32x2048xf32>
    %78 = tpu.matmul %76, %77, %cst_35 {dimension_numbers = #tpu.dot_dimension_numbers<[1], [0], [0], [1], [0, 0, 1, 1], [], []>} : vector<32x8xbf16>, vector<8x2048xbf16>, vector<32x2048xf32> -> vector<32x2048xf32>
    %c0_36 = arith.constant 0 : index
    %c0_37 = arith.constant 0 : index
    %79 = vector.load %arg11[%c0_36, %c0_37] : memref<1x2048xf32, #tpu.memory_space<vmem>>, vector<1x2048xf32>
    %80 = vector.broadcast %79 : vector<1x2048xf32> to vector<32x2048xf32>
    %81 = arith.addf %78, %80 : vector<32x2048xf32>
    %cst_38 = arith.constant 0.000000e+00 : f32
    %82 = vector.broadcast %cst_38 : f32 to vector<32x2048xf32>
    %83 = arith.maximumf %81, %82 : vector<32x2048xf32>
    %84 = arith.truncf %83 : vector<32x2048xf32> to vector<32x2048xbf16>
    %c0_39 = arith.constant 0 : index
    %c0_40 = arith.constant 0 : index
    %85 = vector.load %arg12[%c0_39, %c0_40] : memref<2048x8xbf16, #tpu.memory_space<vmem>>, vector<2048x8xbf16>
    %cst_41 = arith.constant dense<0.000000e+00> : vector<32x8xf32>
    %86 = tpu.matmul %84, %85, %cst_41 {dimension_numbers = #tpu.dot_dimension_numbers<[1], [0], [0], [1], [0, 0, 1, 1], [], []>} : vector<32x2048xbf16>, vector<2048x8xbf16>, vector<32x8xf32> -> vector<32x8xf32>
    %c0_42 = arith.constant 0 : index
    %c0_43 = arith.constant 0 : index
    %87 = vector.load %arg13[%c0_42, %c0_43] : memref<1x8xf32, #tpu.memory_space<vmem>>, vector<1x8xf32>
    %88 = vector.broadcast %87 : vector<1x8xf32> to vector<32x8xf32>
    %89 = arith.addf %86, %88 : vector<32x8xf32>
    %90 = arith.addf %75, %89 : vector<32x8xf32>
    %cst_44 = arith.constant dense<0.000000e+00> : vector<32xf32>
    %91 = vector.multi_reduction <add>, %90, %cst_44 [1] : vector<32x8xf32> to vector<32xf32>
    %92 = vector.shape_cast %91 : vector<32xf32> to vector<32x1xf32>
    %cst_45 = arith.constant 1.250000e-01 : f32
    %93 = vector.broadcast %cst_45 : f32 to vector<32x1xf32>
    %94 = arith.mulf %92, %93 : vector<32x1xf32>
    %95 = vector.broadcast %94 : vector<32x1xf32> to vector<32x8xf32>
    %96 = arith.subf %90, %95 : vector<32x8xf32>
    %97 = arith.mulf %96, %96 : vector<32x8xf32>
    %cst_46 = arith.constant dense<0.000000e+00> : vector<32xf32>
    %98 = vector.multi_reduction <add>, %97, %cst_46 [1] : vector<32x8xf32> to vector<32xf32>
    %99 = vector.shape_cast %98 : vector<32xf32> to vector<32x1xf32>
    %cst_47 = arith.constant 1.250000e-01 : f32
    %100 = vector.broadcast %cst_47 : f32 to vector<32x1xf32>
    %101 = arith.mulf %99, %100 : vector<32x1xf32>
    %102 = vector.broadcast %94 : vector<32x1xf32> to vector<32x8xf32>
    %103 = arith.subf %90, %102 : vector<32x8xf32>
    %cst_48 = arith.constant 9.99999974E-6 : f32
    %104 = vector.broadcast %cst_48 : f32 to vector<32x1xf32>
    %105 = arith.addf %101, %104 : vector<32x1xf32>
    %106 = math.rsqrt %105 : vector<32x1xf32>
    %107 = vector.broadcast %106 : vector<32x1xf32> to vector<32x8xf32>
    %108 = arith.mulf %103, %107 : vector<32x8xf32>
    %c0_49 = arith.constant 0 : index
    %c0_50 = arith.constant 0 : index
    %109 = vector.load %arg14[%c0_49, %c0_50] : memref<1x8xf32, #tpu.memory_space<vmem>>, vector<1x8xf32>
    %110 = vector.broadcast %109 : vector<1x8xf32> to vector<32x8xf32>
    %111 = arith.mulf %108, %110 : vector<32x8xf32>
    %c0_51 = arith.constant 0 : index
    %c0_52 = arith.constant 0 : index
    %112 = vector.load %arg15[%c0_51, %c0_52] : memref<1x8xf32, #tpu.memory_space<vmem>>, vector<1x8xf32>
    %113 = vector.broadcast %112 : vector<1x8xf32> to vector<32x8xf32>
    %114 = arith.addf %111, %113 : vector<32x8xf32>
    %115 = vector.shape_cast %114 : vector<32x8xf32> to vector<8x4x8xf32>
    %cst_53 = arith.constant 1.000000e+00 : f32
    %116 = vector.broadcast %cst_53 : f32 to vector<8x4xf32>
    %117 = arith.subf %116, %0 : vector<8x4xf32>
    %118 = vector.shape_cast %117 : vector<8x4xf32> to vector<8x1x4xf32>
    "tpu.trace_start"() <{level = 10 : i32, message = "nqk,nke->nqe"}> : () -> ()
    %cst_54 = arith.constant dense<0.000000e+00> : vector<8x1x8xf32>
    %119 = tpu.matmul %118, %115, %cst_54 {dimension_numbers = #tpu.dot_dimension_numbers<[2], [1], [1], [2], [0, 0, 0, 1, 1, 2], [0], [0]>} : vector<8x1x4xf32>, vector<8x4x8xf32>, vector<8x1x8xf32> -> vector<8x1x8xf32>
    "tpu.trace_stop"() : () -> ()
    %120 = vector.shape_cast %119 : vector<8x1x8xf32> to vector<8x8xf32>
    %c0_55 = arith.constant 0 : index
    %c0_56 = arith.constant 0 : index
    %121 = vector.load %arg16[%c0_55, %c0_56] : memref<8x8xf32, #tpu.memory_space<vmem>>, vector<8x8xf32>
    tpu.vector_store %arg16[%c0_55, %c0_56], %120 {strides = array<i32>} : memref<8x8xf32, #tpu.memory_space<vmem>>, vector<8x8xf32>,
    return
  }
}

</mosaic_0001>

<bundles_post_ra>
// kernel: tpu_custom_call.1
= control target key start
LH: loop header
LB: loop body
LE: loop exit
PB: predicated region body
PF: predicated region fallthrough
CT: control target
= control target key end

     0   :  { %s4912_s0 = inlined_call_operand.vmem [shape: f32[8,4,2], index: 0, kind: input, shape index: {}]   ;;  %s4913_s1 = inlined_call_operand.vmem [shape: f32[8,4], index: 1, kind: input, shape index: {}]   ;;  %s4914_s2 = inlined_call_operand.vmem [shape: bf16[2,8], index: 2, kind: input, shape index: {}]   ;;  %s4915_s3 = inlined_call_operand.vmem [shape: f32[1,8], index: 3, kind: input, shape index: {}]   ;;  %s4916_s4 = inlined_call_operand.vmem [shape: bf16[8,24], index: 4, kind: input, shape index: {}]   ;;  %s4917_s5 = inlined_call_operand.vmem [shape: f32[1,24], index: 5, kind: input, shape index: {}]   ;;  %s4918_s6 = inlined_call_operand.vmem [shape: bf16[8,8], index: 6, kind: input, shape index: {}]   ;;  %s4919_s7 = inlined_call_operand.vmem [shape: f32[1,8], index: 7, kind: input, shape index: {}]   ;;  %s4920_s8 = inlined_call_operand.vmem [shape: f32[1,8], index: 8, kind: input, shape index: {}]   ;;  %s4921_s9 = inlined_call_operand.vmem [shape: f32[1,8], index: 9, kind: input, shape index: {}]   ;;  %s4922_s10 = inlined_call_operand.vmem [shape: bf16[8,2048], index: 10, kind: input, shape index: {}]   ;;  %s4923_s11 = inlined_call_operand.vmem [shape: f32[1,2048], index: 11, kind: input, shape index: {}]   ;;  %s4924_s12 = inlined_call_operand.vmem [shape: bf16[2048,8], index: 12, kind: input, shape index: {}]   ;;  %s4925_s13 = inlined_call_operand.vmem [shape: f32[1,8], index: 13, kind: input, shape index: {}]   ;;  %s4926_s14 = inlined_call_operand.vmem [shape: f32[1,8], index: 14, kind: input, shape index: {}]   ;;  %s4927_s15 = inlined_call_operand.vmem [shape: f32[1,8], index: 15, kind: input, shape index: {}]   ;;  %s4928_s16 = inlined_call_operand.hbm [shape: f32[8,8], index: 16, kind: output, shape index: {}]  }
   0x1   :  { %4930 = sst [smem:[#allocation5_spill]] %s4912_s0 }
   0x2   :  { %v120_v0 = vld [vmem:[%s4914_s2] sm:$0x1]  ;;  %vm132_vm0 = vcmask 1040384   ;;  %s4931_s25 = sld [smem:[#allocation5_spill]] }
   0x3   :  { %v134_v2 = vsel %vm132_vm0, %v120_v0, 0 }
   0x4   :  { %143 = vmatpush.bf16.msra.mxu0 %v134_v2 }
   0x8   :  { %v79_v1 = vld [vmem:[%s4931_s25] sm:$0xf]  ;;  %v80_v3 = vld [vmem:[%s4931_s25 + $0x4] sm:$0xf]  ;;  %v81_v4 = vld [vmem:[%s4931_s25 + $0x8] sm:$0xf] }
   0x9   :  { %v82_v5 = vld [vmem:[%s4931_s25 + $0xc] sm:$0xf]  ;;  %95 = vst [vmem:[#allocation1] ss:$2 sm:$0xff] %v79_v1  ;;  %v83_v6 = vld [vmem:[%s4931_s25 + $0x10] sm:$0xf] }
   0xa   :  { %97 = vst [vmem:[#allocation1 + $0x1] ss:$2 sm:$0xff] %v80_v3  ;;  %v84_v7 = vld [vmem:[%s4931_s25 + $0x14] sm:$0xf]  ;;  %v85_v8 = vld [vmem:[%s4931_s25 + $0x18] sm:$0xf] }
   0xb   :  { %99 = vst [vmem:[#allocation1 + $0x10] ss:$2 sm:$0xff] %v81_v4  ;;  %v86_v9 = vld [vmem:[%s4931_s25 + $0x1c] sm:$0xf] }
   0xc   :  { %101 = vst [vmem:[#allocation1 + $0x11] ss:$2 sm:$0xff] %v82_v5 }
   0xd   :  { %103 = vst [vmem:[#allocation1 + $0x20] ss:$2 sm:$0xff] %v83_v6 }
   0xe   :  { %105 = vst [vmem:[#allocation1 + $0x21] ss:$2 sm:$0xff] %v84_v7 }
   0xf   :  { %107 = vst [vmem:[#allocation1 + $0x30] ss:$2 sm:$0xff] %v85_v8 }
  0x10   :  { %109 = vst [vmem:[#allocation1 + $0x31] ss:$2 sm:$0xff] %v86_v9 }
  0x11   :  { %21 = vsyncpa [#allocation3], 0  ;;  %v110_v10 = vld.sshfl [vmem:[#allocation1] sm:$0xff pattern:$0x75316420]  ;;  %vm125_vm1 = vcmask 15360  }
  0x12   :  { %v157_v16 = vld [vmem:[%s4916_s4] sm:$0xf]  ;;  %vm169_vm2 = vcmask 1043456   ;;  %vm162_vm3 = vcmask 64512   ;;  %s3917_s28 = smov 120   ;;  %vm547_vm4 = vcmask 1041408  }
  0x13   :  { %v111_v11 = vld.sshfl [vmem:[#allocation1 + $0x10] sm:$0xff pattern:$0x75316420]  ;;  %v171_v17 = vsel %vm169_vm2, %v157_v16, 0  ;;  %v3834_v19 = vld [vmem:[%s4915_s3] ss:$0 sm:$0xff] }
  0x14   :  { %v118_v12 = vpack.c.bf16 %v111_v11, %v110_v10  ;;  %180 = vmatpush.bf16.msra.mxu1 %v171_v17  ;;  %v3835_v29 = vld [vmem:[%s4917_s5] ss:$0 sm:$0xff]  ;;  %s3918_s5 = smov 112   ;;  %vm444_vm5 = vcmask 27648   ;;  %vm543_vm6 = vcmask 31744   ;;  %s3112_s2 = sshll.u32 %s4928_s16, 4  ;;  %s3113_s2 = int_to_ptr.hbm [resolvable:$true] %s3112_s2 }
  0x15   :  { %v112_v13 = vld.sshfl [vmem:[#allocation1 + $0x20] sm:$0xff pattern:$0x75316420] }
  0x16   :  { %3121 = vmatmul.msk.bf16.vlgmr.msra.gmra.mxu0 %vm125_vm1, %v118_v12 }
  0x17   :  { %v113_v14 = vld.sshfl [vmem:[#allocation1 + $0x30] sm:$0xff pattern:$0x75316420] }
  0x18   :  { %v119_v15 = vpack.c.bf16 %v113_v14, %v112_v13 }
  0x26   :  { %3122 = vmatmul.msk.bf16.gmra.mxu0 %vm125_vm1, %v119_v15 }
  0x93   :  { %v145_v18 = vpop.f32.mrf.mxu0 }
  0x94   :  { %v4039_v21 = vadd.f32 %v3834_v19, %v145_v18 }
  0x9b   :  { %v147_v20 = vpop.f32.mrf.mxu0 }
  0x9c   :  { %v4041_v22 = vadd.f32 %v3834_v19, %v147_v20 }
  0x9e   :  { %v155_v23 = vpack.c.bf16 %v4041_v22, %v4039_v21 }
  0xa0   :  { %3123 = vmatmul.msk.bf16.vlgmr.msra.gmra.mxu1 %vm162_vm3, %v155_v23 }
  0xa3   :  { %v150_v24 = vpop.f32.mrf.mxu0 }
  0xa4   :  { %v4046_v25 = vadd.f32 %v3834_v19, %v150_v24 }
  0xab   :  { %v152_v26 = vpop.f32.mrf.mxu0 }
  0xac   :  { %v4048_v27 = vadd.f32 %v3834_v19, %v152_v26 }
  0xae   :  { %v156_v28 = vpack.c.bf16 %v4048_v27, %v4046_v25 }
  0xb0   :  { %3124 = vmatmul.msk.bf16.gmra.mxu1 %vm162_vm3, %v156_v28  ;;  %v4112_v28 = vld [vmem:[%s4913_s1] sm:$0xff] }
 0x11d   :  { %v182_v30 = vpop.f32.mrf.mxu1 }
 0x11e   :  { %v183_v31 = vadd.f32 %v3835_v29, %v182_v30 }
 0x120   :  { %v196_v32 = vrot.slane %v183_v31, 4  ;;  %v204_v33 = vpack.c.bf16 %v183_v31, %v183_v31 }
 0x122   :  { %v213_v34 = vunpack.c.l.b16 %v204_v33  ;;  %v205_v35 = vpack.c.bf16 %v196_v32, %v196_v32  ;;  %v57_v32 = vrot.slane %v4112_v28, 1 }
 0x124   :  { %v214_v36 = vpack.c.b16 %v213_v34, %v213_v34  ;;  %v237_v41 = vunpack.c.l.b16 %v205_v35 }
 0x125   :  { %v184_v37 = vpop.f32.mrf.mxu1 }
 0x126   :  { %v185_v38 = vadd.f32 %v3835_v29, %v184_v37  ;;  %215 = vrot.lane.b32.xlu0 %v214_v36, %s3917_s28  ;;  %v4062_v45 = vpack.c.b16 %v237_v41, %v237_v41 }
 0x128   :  { %v197_v39 = vrot.slane %v185_v38, 4  ;;  %v4057_v40 = vpack.c.bf16 %v185_v38, %v185_v38 }
 0x12a   :  { %v261_v42 = vunpack.c.l.b16 %v4057_v40  ;;  %v4060_v43 = vpack.c.bf16 %v197_v39, %v197_v39 }
 0x12c   :  { %v262_v44 = vpack.c.b16 %v261_v42, %v261_v42  ;;  %v285_v50 = vunpack.c.l.b16 %v4060_v43 }
 0x12d   :  { %v187_v46 = vpop.f32.mrf.mxu1 }
 0x12e   :  { %v188_v47 = vadd.f32 %v3835_v29, %v187_v46  ;;  %263 = vrot.lane.b32.xlu1 %v262_v44, %s3917_s28  ;;  %239 = vrot.lane.b32.xlu0 %v4062_v45, %s3917_s28  ;;  %v286_v53 = vpack.c.b16 %v285_v50, %v285_v50 }
 0x130   :  { %v198_v48 = vrot.slane %v188_v47, 4  ;;  %v208_v49 = vpack.c.bf16 %v188_v47, %v188_v47  ;;  %v58_v47 = vrot.slane %v4112_v28, 2 }
 0x132   :  { %v209_v51 = vpack.c.bf16 %v198_v48, %v198_v48  ;;  %v309_v52 = vunpack.c.l.b16 %v208_v49 }
 0x134   :  { %v4068_v54 = vpack.c.b16 %v309_v52, %v309_v52  ;;  %v333_v57 = vunpack.c.l.b16 %v209_v51 }
 0x135   :  { %v189_v55 = vpop.f32.mrf.mxu1 }
 0x136   :  { %v190_v56 = vadd.f32 %v3835_v29, %v189_v55  ;;  %287 = vrot.lane.b32.xlu1 %v286_v53, %s3917_s28  ;;  %311 = vrot.lane.b32.xlu0 %v4068_v54, %s3917_s28  ;;  %v4073_v62 = vpack.c.b16 %v333_v57, %v333_v57  ;;  %v71_v29 = vmul.f32 -1e+30, %v4112_v28 }
 0x138   :  { %v199_v58 = vrot.slane %v190_v56, 4  ;;  %v210_v59 = vpack.c.bf16 %v190_v56, %v190_v56  ;;  %v420_v30 = vperm.slane %v71_v29, 0  ;;  %v73_v56 = vmul.f32 -1e+30, %v58_v47 }
 0x13a   :  { %v211_v60 = vpack.c.bf16 %v199_v58, %v199_v58  ;;  %v357_v61 = vunpack.c.l.b16 %v210_v59 }
 0x13c   :  { %v4075_v63 = vpack.c.b16 %v357_v61, %v357_v61  ;;  %v381_v0 = vunpack.c.l.b16 %v211_v60  ;;  %v422_v61 = vperm.slane %v73_v56, 0 }
 0x13e   :  { %359 = vrot.lane.b32.xlu2 %v4075_v63, %s3917_s28  ;;  %335 = vrot.lane.b32.xlu1 %v4073_v62, %s3917_s28  ;;  %v4082_v1 = vpack.c.b16 %v381_v0, %v381_v0  ;;  %v62_v0 = vrot.slane %v4112_v28, 6 }
 0x13f   :  { %541 = vrot.lane.b32.xlu0 %v214_v36, %s3918_s5 }
 0x146   :  { %383 = vrot.lane.b32.xlu2 %v4082_v1, %s3917_s28  ;;  %585 = vrot.lane.b32.xlu1 %v262_v44, %s3918_s5 }
 0x14e   :  { %606 = vrot.lane.b32.xlu2 %v286_v53, %s3918_s5 }
 0x198   :  { %v216_v2 = vpop.permute.xlu0 %215  ;;  %v360_v4 = vpop.permute.xlu2 %359 }
 0x199   :  { %v221_v3 = vsel %vm162_vm3, %v216_v2, 0  ;;  %v365_v5 = vsel %vm162_vm3, %v360_v4, 0 }
 0x19a   :  { %230 = vmatpush.bf16.xpose.msra.mxu2 %v221_v3 }
 0x1a0   :  { %v264_v6 = vpop.permute.xlu1 %263  ;;  %v240_v7 = vpop.permute.xlu0 %239 }
 0x1a1   :  { %3125 = vmatmul.msk.bf16.vlgmr.msra.gmra.mxu2 %vm162_vm3, %v204_v33  ;;  %v269_v8 = vsel %vm162_vm3, %v264_v6, 0  ;;  %v245_v9 = vsel %vm162_vm3, %v240_v7, 0  ;;  %v384_v10 = vpop.permute.xlu2 %383 }
 0x1a2   :  { %278 = vmatpush.bf16.xpose.msrb.mxu2 %v269_v8  ;;  %254 = vmatpush.bf16.xpose.msra.mxu3 %v245_v9  ;;  %v389_v12 = vsel %vm162_vm3, %v384_v10, 0  ;;  %v77_v8 = vmul.f32 -1e+30, %v62_v0 }
 0x1a8   :  { %v288_v11 = vpop.permute.xlu1 %287  ;;  %v312_v13 = vpop.permute.xlu0 %311 }
 0x1a9   :  { %v293_v14 = vsel %vm162_vm3, %v288_v11, 0  ;;  %3126 = vmatmul.msk.bf16.vlgmr.msra.gmra.mxu3 %vm162_vm3, %v205_v35  ;;  %v317_v15 = vsel %vm162_vm3, %v312_v13, 0  ;;  %v607_v20 = vpop.permute.xlu2 %606  ;;  %v72_v35 = vmul.f32 -1e+30, %v57_v32 }
 0x1aa   :  { %374 = vmatpush.bf16.xpose.msra.mxu2 %v365_v5  ;;  %302 = vmatpush.bf16.xpose.msrb.mxu3 %v293_v14  ;;  %v612_v26 = vsel %vm547_vm4, %v607_v20, 0  ;;  %v63_v14 = vrot.slane %v4112_v28, 7 }
 0x1ab   :  { %326 = vmatpush.bf16.xpose.msrb.mxu0 %v317_v15  ;;  %v421_v38 = vperm.slane %v72_v35, 0 }
 0x1b0   :  { %v336_v16 = vpop.permute.xlu1 %335 }
 0x1b1   :  { %v542_v17 = vpop.permute.xlu0 %541  ;;  %3127 = vmatmul.msk.bf16.vlgmr.msrb.gmra.mxu2 %vm162_vm3, %v4057_v40  ;;  %v341_v18 = vsel %vm162_vm3, %v336_v16, 0  ;;  %v61_v40 = vrot.slane %v4112_v28, 5 }
 0x1b2   :  { %398 = vmatpush.bf16.xpose.msra.mxu3 %v389_v12  ;;  %v549_v19 = vsel %vm547_vm4, %v542_v17, 0  ;;  %3129 = vmatmul.msk.bf16.vlgmr.msrb.gmra.mxu0 %vm162_vm3, %v208_v49  ;;  %v59_v49 = vrot.slane %v4112_v28, 3  ;;  %v426_v12 = vperm.slane %v77_v8, 0 }
 0x1b3   :  { %350 = vmatpush.bf16.xpose.msrb.mxu1 %v341_v18  ;;  %558 = vmatpush.bf16.msra.mxu0 %v549_v19  ;;  %v76_v44 = vmul.f32 -1e+30, %v61_v40  ;;  %v78_v18 = vmul.f32 -1e+30, %v63_v14 }
 0x1b4   :  { %v74_v57 = vmul.f32 -1e+30, %v59_v49 }
 0x1b6   :  { %v423_v3 = vperm.slane %v74_v57, 0 }
 0x1b8   :  { %v586_v23 = vpop.permute.xlu1 %585 }
 0x1b9   :  { %v591_v24 = vsel %vm547_vm4, %v586_v23, 0  ;;  %3128 = vmatmul.msk.bf16.vlgmr.msrb.gmra.mxu3 %vm162_vm3, %v4060_v43  ;;  %v427_v23 = vperm.slane %v78_v18, 0 }
 0x1ba   :  { %3130 = vmatmul.msk.bf16.vlgmr.msrb.gmra.mxu1 %vm162_vm3, %v209_v51  ;;  %600 = vmatpush.bf16.msrb.mxu2 %v591_v24  ;;  %v425_v51 = vperm.slane %v76_v44, 0 }
 0x1bb   :  { %621 = vmatpush.bf16.msrb.mxu3 %v612_v26 }
 0x1c1   :  { %3131 = vmatmul.msk.bf16.vlgmr.msra.gmra.mxu2 %vm162_vm3, %v210_v59 }
 0x1c9   :  { %3132 = vmatmul.msk.bf16.vlgmr.msra.gmra.mxu3 %vm162_vm3, %v211_v60 }
 0x224   :  { %v232_v31 = vpop.f32.mrf.mxu2 }
 0x225   :  { %v404_v33 = vmul.f32 0.35355338, %v232_v31  ;;  %v60_v31 = vrot.slane %v4112_v28, 4 }
 0x227   :  { %v4116_v34 = vadd.f32 %v420_v30, %v404_v33  ;;  %v75_v32 = vmul.f32 -1e+30, %v60_v31 }
 0x229   :  { %v445_v36 = vsel %vm444_vm5, %v4116_v34, -inf  ;;  %v424_v35 = vperm.slane %v75_v32, 0 }
 0x22a   :  { %446 = vmax.xlane.f32.xlu1 %v445_v36 }
 0x22c   :  { %v234_v37 = vpop.f32.mrf.mxu2  ;;  %v256_v39 = vpop.f32.mrf.mxu3 }
 0x22d   :  { %v405_v41 = vmul.f32 0.35355338, %v256_v39 }
 0x22f   :  { %v328_v42 = vpop.f32.mrf.mxu0  ;;  %v4121_v43 = vadd.f32 %v421_v38, %v405_v41 }
 0x230   :  { %v408_v33 = vmul.f32 0.35355338, %v328_v42 }
 0x231   :  { %v448_v46 = vsel %vm444_vm5, %v4121_v43, -inf }
 0x232   :  { %449 = vmax.xlane.f32.xlu2 %v448_v46  ;;  %v440_v36 = vadd.f32 %v424_v35, %v408_v33 }
 0x234   :  { %v280_v48 = vpop.f32.mrf.mxu2  ;;  %v258_v50 = vpop.f32.mrf.mxu3  ;;  %v457_v37 = vsel %vm444_vm5, %v440_v36, -inf }
 0x235   :  { %v406_v59 = vmul.f32 0.35355338, %v280_v48 }
 0x237   :  { %v352_v52 = vpop.f32.mrf.mxu1  ;;  %v330_v53 = vpop.f32.mrf.mxu0  ;;  %v438_v7 = vadd.f32 %v422_v61, %v406_v59 }
 0x238   :  { %v409_v55 = vmul.f32 0.35355338, %v352_v52 }
 0x239   :  { %v451_v11 = vsel %vm444_vm5, %v438_v7, -inf }
 0x23a   :  { %v441_v58 = vadd.f32 %v425_v51, %v409_v55 }
 0x23c   :  { %v460_v60 = vsel %vm444_vm5, %v441_v58, -inf  ;;  %v282_v2 = vpop.f32.mrf.mxu2  ;;  %v304_v4 = vpop.f32.mrf.mxu3 }
 0x23d   :  { %461 = vmax.xlane.f32.xlu2 %v460_v60  ;;  %v407_v5 = vmul.f32 0.35355338, %v304_v4 }
 0x23f   :  { %v354_v6 = vpop.f32.mrf.mxu1  ;;  %v4129_v9 = vadd.f32 %v423_v3, %v407_v5 }
 0x241   :  { %v454_v10 = vsel %vm444_vm5, %v4129_v9, -inf }
 0x242   :  { %455 = vmax.xlane.f32.xlu0 %v454_v10 }
 0x243   :  { %564 = vrot.lane.b32.xlu1 %v4062_v45, %s3918_s5 }
 0x244   :  { %v376_v13 = vpop.f32.mrf.mxu2  ;;  %v306_v15 = vpop.f32.mrf.mxu3 }
 0x245   :  { %452 = vmax.xlane.f32.xlu2 %v451_v11  ;;  %v410_v16 = vmul.f32 0.35355338, %v376_v13 }
 0x247   :  { %v442_v17 = vadd.f32 %v426_v12, %v410_v16 }
 0x249   :  { %v463_v19 = vsel %vm444_vm5, %v442_v17, -inf }
 0x24c   :  { %v378_v20 = vpop.f32.mrf.mxu2  ;;  %v400_v24 = vpop.f32.mrf.mxu3 }
 0x24d   :  { %464 = vmax.xlane.f32.xlu2 %v463_v19  ;;  %v411_v26 = vmul.f32 0.35355338, %v400_v24 }
 0x24f   :  { %v443_v29 = vadd.f32 %v427_v23, %v411_v26 }
 0x251   :  { %v466_v45 = vsel %vm444_vm5, %v443_v29, -inf }
 0x252   :  { %467 = vmax.xlane.f32.xlu0 %v466_v45 }
 0x254   :  { %v402_v30 = vpop.f32.mrf.mxu3 }
 0x265   :  { %669 = vrot.lane.b32.xlu2 %v4075_v63, %s3918_s5 }
 0x26d   :  { %458 = vmax.xlane.f32.xlu1 %v457_v37 }
 0x29d   :  { %v447_v38 = vpop.xlane.xlu1 %446 }
 0x29e   :  { %v469_v39 = vsub.f32 %v4116_v34, %v447_v38 }
 0x2a0   :  { %v477_v40 = vmul.f32 1.442695, %v469_v39 }
 0x2a2   :  { %3842 = vpow2.f32 %v477_v40 }
 0x2a5   :  { %v450_v41 = vpop.xlane.xlu2 %449 }
 0x2a6   :  { %v470_v44 = vsub.f32 %v4121_v43, %v450_v41 }
 0x2a8   :  { %v3843_v46 = vpop.eup %3842  ;;  %v479_v28 = vmul.f32 1.442695, %v470_v44 }
 0x2a9   :  { %v493_v42 = vsel %vm444_vm5, %v3843_v46, 0.0 }
 0x2aa   :  { %494 = vadd.xlane.f32.xlu2 %v493_v42  ;;  %3844 = vpow2.f32 %v479_v28 }
 0x2b0   :  { %v462_v63 = vpop.xlane.xlu2 %461  ;;  %v3845_v48 = vpop.eup %3844 }
 0x2b1   :  { %v474_v47 = vsub.f32 %v441_v58, %v462_v63  ;;  %v496_v50 = vsel %vm444_vm5, %v3845_v48, 0.0 }
 0x2b2   :  { %497 = vadd.xlane.f32.xlu0 %v496_v50 }
 0x2b3   :  { %v487_v49 = vmul.f32 1.442695, %v474_v47 }
 0x2b5   :  { %3846 = vpow2.f32 %v487_v49  ;;  %v565_v34 = vpop.permute.xlu1 %564  ;;  %v456_v57 = vpop.xlane.xlu0 %455 }
 0x2b6   :  { %v570_v51 = vsel %vm547_vm4, %v565_v34, 0  ;;  %v472_v14 = vsub.f32 %v4129_v9, %v456_v57 }
 0x2b7   :  { %579 = vmatpush.bf16.msra.mxu1 %v570_v51 }
 0x2b8   :  { %v453_v52 = vpop.xlane.xlu2 %452  ;;  %v483_v16 = vmul.f32 1.442695, %v472_v14 }
 0x2b9   :  { %v471_v43 = vsub.f32 %v438_v7, %v453_v52 }
 0x2bb   :  { %v4148_v53 = vpop.eup %3846  ;;  %v481_v55 = vmul.f32 1.442695, %v471_v43 }
 0x2bc   :  { %v508_v56 = vsel %vm444_vm5, %v4148_v53, 0.0 }
 0x2bd   :  { %3848 = vpow2.f32 %v481_v55  ;;  %509 = vadd.xlane.f32.xlu0 %v508_v56 }
 0x2c0   :  { %v465_v58 = vpop.xlane.xlu2 %464 }
 0x2c1   :  { %v475_v59 = vsub.f32 %v442_v17, %v465_v58 }
 0x2c3   :  { %v3849_v60 = vpop.eup %3848  ;;  %v489_v61 = vmul.f32 1.442695, %v475_v59 }
 0x2c4   :  { %v499_v0 = vsel %vm444_vm5, %v3849_v60, 0.0 }
 0x2c5   :  { %3850 = vpow2.f32 %v489_v61  ;;  %500 = vadd.xlane.f32.xlu0 %v499_v0  ;;  %v468_v2 = vpop.xlane.xlu0 %467 }
 0x2c6   :  { %v476_v3 = vsub.f32 %v443_v29, %v468_v2 }
 0x2c8   :  { %v670_v4 = vpop.permute.xlu2 %669  ;;  %v491_v6 = vmul.f32 1.442695, %v476_v3 }
 0x2c9   :  { %v675_v5 = vsel %vm547_vm4, %v670_v4, 0 }
 0x2ca   :  { %684 = vmatpush.bf16.msra.mxu2 %v675_v5  ;;  %3852 = vpow2.f32 %v491_v6 }
 0x2cb   :  { %v3851_v7 = vpop.eup %3850 }
 0x2cc   :  { %v511_v8 = vsel %vm444_vm5, %v3851_v7, 0.0 }
 0x2cd   :  { %512 = vadd.xlane.f32.xlu0 %v511_v8  ;;  %v744_v8 = vld [vmem:[%s4918_s6] sm:$0xf] }
 0x2d0   :  { %v4155_v10 = vpop.eup %3852 }
 0x2d1   :  { %v514_v11 = vsel %vm444_vm5, %v4155_v10, 0.0 }
 0x2d2   :  { %515 = vadd.xlane.f32.xlu2 %v514_v11 }
 0x2e0   :  { %v459_v12 = vpop.xlane.xlu1 %458 }
 0x2e1   :  { %627 = vrot.lane.b32.xlu0 %v4068_v54, %s3918_s5  ;;  %v473_v13 = vsub.f32 %v440_v36, %v459_v12 }
 0x2e3   :  { %v485_v15 = vmul.f32 1.442695, %v473_v13 }
 0x2e5   :  { %3854 = vpow2.f32 %v485_v15 }
 0x2e6   :  { %3856 = vpow2.f32 %v483_v16 }
 0x2ea   :  { %648 = vrot.lane.b32.xlu2 %v4073_v62, %s3918_s5 }
 0x2eb   :  { %v3855_v17 = vpop.eup %3854 }
 0x2ec   :  { %v505_v18 = vsel %vm444_vm5, %v3855_v17, 0.0  ;;  %v3857_v19 = vpop.eup %3856 }
 0x2ed   :  { %506 = vadd.xlane.f32.xlu1 %v505_v18  ;;  %v502_v20 = vsel %vm444_vm5, %v3857_v19, 0.0 }
 0x2f5   :  { %503 = vadd.xlane.f32.xlu1 %v502_v20 }
 0x30e   :  { %690 = vrot.lane.b32.xlu1 %v4082_v1, %s3918_s5 }
 0x31d   :  { %v495_v54 = vpop.xlane.xlu2 %494 }
 0x31e   :  { %3858 = vrcp.f32 %v495_v54 }
 0x324   :  { %v3859_v9 = vpop.eup %3858 }
 0x325   :  { %v525_v23 = vmul.f32 %v3859_v9, %v3843_v46  ;;  %v498_v24 = vpop.xlane.xlu0 %497 }
 0x326   :  { %3860 = vrcp.f32 %v498_v24 }
 0x327   :  { %v533_v26 = vpack.c.bf16 %v525_v23, %v525_v23  ;;  %v3836_v23 = vld [vmem:[%s4919_s7] ss:$0 sm:$0xff] }
 0x329   :  { %3133 = vmatmul.msk.bf16.vlgmr.msra.gmra.mxu0 %vm543_vm6, %v533_v26 }
 0x32c   :  { %v3861_v62 = vpop.eup %3860 }
 0x32d   :  { %v526_v29 = vmul.f32 %v3861_v62, %v3845_v48 }
 0x32f   :  { %v534_v30 = vpack.c.bf16 %v526_v29, %v526_v29 }
 0x330   :  { %v510_v45 = vpop.xlane.xlu0 %509 }
 0x331   :  { %3134 = vmatmul.msk.bf16.vlgmr.msra.gmra.mxu1 %vm543_vm6, %v534_v30 }
 0x338   :  { %v501_v31 = vpop.xlane.xlu0 %500 }
 0x339   :  { %3862 = vrcp.f32 %v501_v31 }
 0x33a   :  { %3864 = vrcp.f32 %v510_v45 }
 0x33f   :  { %v3863_v32 = vpop.eup %3862 }
 0x340   :  { %v527_v1 = vmul.f32 %v3863_v32, %v3849_v60  ;;  %v513_v35 = vpop.xlane.xlu0 %512  ;;  %v3865_v37 = vpop.eup %3864 }
 0x341   :  { %3866 = vrcp.f32 %v513_v35  ;;  %v530_v39 = vmul.f32 %v3865_v37, %v4148_v53 }
 0x342   :  { %v535_v33 = vpack.c.bf16 %v527_v1, %v527_v1 }
 0x343   :  { %v538_v46 = vpack.c.bf16 %v530_v39, %v530_v39 }
 0x344   :  { %3135 = vmatmul.msk.bf16.vlgmr.msrb.gmra.mxu2 %vm543_vm6, %v535_v33 }
 0x345   :  { %v516_v36 = vpop.xlane.xlu2 %515 }
 0x347   :  { %v3867_v38 = vpop.eup %3866 }
 0x348   :  { %v531_v40 = vmul.f32 %v3867_v38, %v3851_v7 }
 0x34a   :  { %v539_v28 = vpack.c.bf16 %v531_v40, %v531_v40 }
 0x34d   :  { %v649_v41 = vpop.permute.xlu2 %648 }
 0x34e   :  { %v654_v44 = vsel %vm547_vm4, %v649_v41, 0 }
 0x34f   :  { %663 = vmatpush.bf16.msrb.mxu1 %v654_v44 }
 0x352   :  { %3138 = vmatmul.msk.bf16.vlgmr.msrb.gmra.mxu1 %vm543_vm6, %v538_v46 }
 0x353   :  { %v628_v42 = vpop.permute.xlu0 %627 }
 0x354   :  { %v633_v63 = vsel %vm547_vm4, %v628_v42, 0  ;;  %3139 = vmatmul.msk.bf16.vlgmr.msra.gmra.mxu2 %vm543_vm6, %v539_v28 }
 0x355   :  { %642 = vmatpush.bf16.msrb.mxu0 %v633_v63 }
 0x360   :  { %v507_v47 = vpop.xlane.xlu1 %506 }
 0x361   :  { %3868 = vrcp.f32 %v507_v47 }
 0x367   :  { %v3869_v48 = vpop.eup %3868 }
 0x368   :  { %v529_v49 = vmul.f32 %v3869_v48, %v3855_v17  ;;  %v504_v50 = vpop.xlane.xlu1 %503 }
 0x369   :  { %3870 = vrcp.f32 %v504_v50 }
 0x36a   :  { %v537_v34 = vpack.c.bf16 %v529_v49, %v529_v49  ;;  %3872 = vrcp.f32 %v516_v36 }
 0x36c   :  { %3137 = vmatmul.msk.bf16.vlgmr.msrb.gmra.mxu0 %vm543_vm6, %v537_v34 }
 0x36f   :  { %v3871_v51 = vpop.eup %3870 }
 0x370   :  { %v528_v52 = vmul.f32 %v3871_v51, %v3857_v19  ;;  %v3873_v53 = vpop.eup %3872 }
 0x371   :  { %v532_v55 = vmul.f32 %v3873_v53, %v4155_v10  ;;  %v756_v10 = vsel %vm169_vm2, %v744_v8, 0 }
 0x372   :  { %v536_v43 = vpack.c.bf16 %v528_v52, %v528_v52  ;;  %765 = vmatpush.bf16.msra.mxu0 %v756_v10 }
 0x373   :  { %v540_v58 = vpack.c.bf16 %v532_v55, %v532_v55 }
 0x374   :  { %3136 = vmatmul.msk.bf16.vlgmr.msrb.gmra.mxu3 %vm543_vm6, %v536_v43 }
 0x380   :  { %v691_v56 = vpop.permute.xlu1 %690 }
 0x381   :  { %v696_v57 = vsel %vm547_vm4, %v691_v56, 0 }
 0x382   :  { %705 = vmatpush.bf16.msra.mxu3 %v696_v57  ;;  %v887_v57 = vld [vmem:[%s4922_s10] sm:$0xff] }
 0x385   :  { %3140 = vmatmul.msk.bf16.vlgmr.msra.gmra.mxu3 %vm543_vm6, %v540_v58  ;;  %v888_v58 = vld [vmem:[%s4922_s10 + $0x8] sm:$0xff] }
 0x3a6   :  { %v560_v59 = vpop.f32.mrf.mxu0 }
 0x3a7   :  { %719 = vst [vmem:[#allocation1] ss:$2 sm:$0xff] %v560_v59 }
 0x3ae   :  { %v562_v60 = vpop.f32.mrf.mxu0  ;;  %v581_v61 = vpop.f32.mrf.mxu1 }
 0x3af   :  { %721 = vst [vmem:[#allocation1 + $0x1] ss:$2 sm:$0xff] %v581_v61  ;;  %v939_v60 = vunpack.c.l.b16 %v887_v57  ;;  %v940_v61 = vunpack.c.h.b16 %v887_v57 }
 0x3b6   :  { %v583_v0 = vpop.f32.mrf.mxu1  ;;  %v734_v15 = vld.sshfl [vmem:[#allocation1] sm:$0xff pattern:$0x75316420] }
 0x3b7   :  { %v941_v0 = vunpack.c.l.b16 %v888_v58 }
 0x3c7   :  { %v602_v2 = vpop.f32.mrf.mxu2 }
 0x3c8   :  { %723 = vst [vmem:[#allocation1 + $0x10] ss:$2 sm:$0xff] %v602_v2  ;;  %v942_v2 = vunpack.c.h.b16 %v888_v58 }
 0x3cf   :  { %v604_v3 = vpop.f32.mrf.mxu2  ;;  %v665_v4 = vpop.f32.mrf.mxu1 }
 0x3d0   :  { %729 = vst [vmem:[#allocation1 + $0x21] ss:$2 sm:$0xff] %v665_v4  ;;  %v955_v4 = vpack.c.b16 %v939_v60, %v939_v60 }
 0x3d2   :  { %v978_v8 = vsel %vm169_vm2, %v955_v4, 0 }
 0x3d3   :  { %1032 = vmatpush.bf16.msra.mxu1 %v978_v8 }
 0x3d7   :  { %v686_v5 = vpop.f32.mrf.mxu2  ;;  %v667_v6 = vpop.f32.mrf.mxu1 }
 0x3d8   :  { %731 = vst [vmem:[#allocation1 + $0x30] ss:$2 sm:$0xff] %v686_v5  ;;  %v956_v5 = vpack.c.b16 %v940_v61, %v940_v61  ;;  %v957_v6 = vpack.c.b16 %v941_v0, %v941_v0 }
 0x3da   :  { %v981_v10 = vsel %vm169_vm2, %v956_v5, 0 }
 0x3db   :  { %1051 = vmatpush.bf16.msrb.mxu2 %v981_v10 }
 0x3df   :  { %v688_v7 = vpop.f32.mrf.mxu2 }
 0x3e0   :  { %v958_v7 = vpack.c.b16 %v942_v2, %v942_v2 }
 0x3e9   :  { %v644_v11 = vpop.f32.mrf.mxu0 }
 0x3ea   :  { %727 = vst [vmem:[#allocation1 + $0x20] ss:$2 sm:$0xff] %v644_v11  ;;  %v984_v11 = vsel %vm169_vm2, %v957_v6, 0 }
 0x3eb   :  { %1070 = vmatpush.bf16.msrb.mxu3 %v984_v11 }
 0x3f1   :  { %v646_v12 = vpop.f32.mrf.mxu0  ;;  %v736_v20 = vld.sshfl [vmem:[#allocation1 + $0x20] sm:$0xff pattern:$0x75316420] }
 0x3f2   :  { %v987_v12 = vsel %vm169_vm2, %v958_v7, 0 }
 0x3f3   :  { %1089 = vmatpush.bf16.msrb.mxu0 %v987_v12 }
 0x3f7   :  { %v623_v13 = vpop.f32.mrf.mxu3 }
 0x3f8   :  { %725 = vst [vmem:[#allocation1 + $0x11] ss:$2 sm:$0xff] %v623_v13 }
 0x3ff   :  { %v625_v14 = vpop.f32.mrf.mxu3  ;;  %v735_v16 = vld.sshfl [vmem:[#allocation1 + $0x10] sm:$0xff pattern:$0x75316420] }
 0x400   :  { %v742_v17 = vpack.c.bf16 %v735_v16, %v734_v15 }
 0x402   :  { %3141 = vmatmul.msk.bf16.vlgmr.msra.gmra.mxu0 %vm162_vm3, %v742_v17 }
 0x408   :  { %v707_v18 = vpop.f32.mrf.mxu3 }
 0x409   :  { %733 = vst [vmem:[#allocation1 + $0x31] ss:$2 sm:$0xff] %v707_v18 }
 0x410   :  { %v709_v19 = vpop.f32.mrf.mxu3  ;;  %v737_v54 = vld.sshfl [vmem:[#allocation1 + $0x30] sm:$0xff pattern:$0x75316420] }
 0x411   :  { %v743_v9 = vpack.c.bf16 %v737_v54, %v736_v20 }
 0x413   :  { %3142 = vmatmul.msk.bf16.gmra.mxu0 %vm162_vm3, %v743_v9 }
 0x47f   :  { %v767_v24 = vpop.f32.mrf.mxu0 }
 0x480   :  { %v768_v26 = vadd.f32 %v3836_v23, %v767_v24 }
 0x482   :  { %v777_v62 = vadd.f32 %v768_v26, %v4039_v21 }
 0x484   :  { %v781_v29 = vsel %vm162_vm3, %v777_v62, 0.0 }
 0x485   :  { %782 = vadd.xlane.f32.xlu0 %v781_v29 }
 0x487   :  { %v769_v45 = vpop.f32.mrf.mxu0 }
 0x488   :  { %v770_v30 = vadd.f32 %v3836_v23, %v769_v45 }
 0x48a   :  { %v778_v31 = vadd.f32 %v770_v30, %v4041_v22 }
 0x48c   :  { %v784_v32 = vsel %vm162_vm3, %v778_v31, 0.0 }
 0x48d   :  { %785 = vadd.xlane.f32.xlu1 %v784_v32 }
 0x490   :  { %v772_v1 = vpop.f32.mrf.mxu0 }
 0x491   :  { %v773_v33 = vadd.f32 %v3836_v23, %v772_v1  ;;  %v889_v1 = vld [vmem:[%s4922_s10 + $0x10] sm:$0xff] }
 0x493   :  { %v779_v35 = vadd.f32 %v773_v33, %v4046_v25  ;;  %v890_v33 = vld [vmem:[%s4922_s10 + $0x18] sm:$0xff] }
 0x495   :  { %v787_v36 = vsel %vm162_vm3, %v779_v35, 0.0 }
 0x496   :  { %788 = vadd.xlane.f32.xlu2 %v787_v36 }
 0x498   :  { %v774_v37 = vpop.f32.mrf.mxu0 }
 0x499   :  { %v775_v38 = vadd.f32 %v3836_v23, %v774_v37 }
 0x49b   :  { %v780_v21 = vadd.f32 %v775_v38, %v4048_v27  ;;  %v944_v38 = vunpack.c.h.b16 %v889_v1 }
 0x49d   :  { %v790_v39 = vsel %vm162_vm3, %v780_v21, 0.0 }
 0x49e   :  { %791 = vadd.xlane.f32.xlu0 %v790_v39  ;;  %v943_v39 = vunpack.c.l.b16 %v889_v1 }
 0x4f8   :  { %v783_v40 = vpop.xlane.xlu0 %782 }
 0x4f9   :  { %v793_v41 = vmul.f32 0.125, %v783_v40  ;;  %v946_v40 = vunpack.c.h.b16 %v890_v33 }
 0x4fb   :  { %v4198_v22 = vsub.f32 %v777_v62, %v793_v41 }
 0x4fd   :  { %v801_v44 = vmul.f32 %v4198_v22, %v4198_v22 }
 0x4ff   :  { %v805_v46 = vsel %vm162_vm3, %v801_v44, 0.0 }
 0x500   :  { %v786_v25 = vpop.xlane.xlu1 %785  ;;  %806 = vadd.xlane.f32.xlu1 %v805_v46  ;;  %v960_v46 = vpack.c.b16 %v944_v38, %v944_v38 }
 0x501   :  { %v794_v28 = vmul.f32 0.125, %v786_v25 }
 0x503   :  { %v4203_v42 = vsub.f32 %v778_v31, %v794_v28 }
 0x505   :  { %v802_v27 = vmul.f32 %v4203_v42, %v4203_v42 }
 0x507   :  { %v808_v63 = vsel %vm162_vm3, %v802_v27, 0.0  ;;  %v959_v27 = vpack.c.b16 %v943_v39, %v943_v39 }
 0x508   :  { %809 = vadd.xlane.f32.xlu2 %v808_v63  ;;  %v962_v63 = vpack.c.b16 %v946_v40, %v946_v40 }
 0x509   :  { %v789_v47 = vpop.xlane.xlu2 %788 }
 0x50a   :  { %v795_v48 = vmul.f32 0.125, %v789_v47 }
 0x50c   :  { %v4208_v49 = vsub.f32 %v779_v35, %v795_v48  ;;  %v3837_v35 = vld [vmem:[%s4920_s8] ss:$0 sm:$0xff] }
 0x50e   :  { %v803_v50 = vmul.f32 %v4208_v49, %v4208_v49 }
 0x510   :  { %v811_v34 = vsel %vm162_vm3, %v803_v50, 0.0  ;;  %v993_v50 = vsel %vm169_vm2, %v960_v46, 0  ;;  %v3710_v46 = vld [vmem:[%s4924_s12 + $0x38] sm:$0xff] }
 0x511   :  { %v792_v51 = vpop.xlane.xlu0 %791  ;;  %812 = vadd.xlane.f32.xlu0 %v811_v34  ;;  %v3838_v34 = vld [vmem:[%s4921_s9] ss:$0 sm:$0xff]  ;;  %1127 = vmatpush.bf16.msra.mxu2 %v993_v50  ;;  %v3732_v50 = vld [vmem:[%s4924_s12 + $0xe8] sm:$0xff] }
 0x512   :  { %v796_v52 = vmul.f32 0.125, %v792_v51 }
 0x514   :  { %v4213_v43 = vsub.f32 %v780_v21, %v796_v52  ;;  %v945_v21 = vunpack.c.l.b16 %v890_v33 }
 0x516   :  { %v804_v53 = vmul.f32 %v4213_v43, %v4213_v43  ;;  %v961_v25 = vpack.c.b16 %v945_v21, %v945_v21 }
 0x518   :  { %v814_v55 = vsel %vm162_vm3, %v804_v53, 0.0  ;;  %v996_v53 = vsel %vm169_vm2, %v961_v25, 0  ;;  %v3734_v25 = vld [vmem:[%s4924_s12 + $0xf8] sm:$0xff] }
 0x519   :  { %815 = vadd.xlane.f32.xlu1 %v814_v55  ;;  %v990_v55 = vsel %vm169_vm2, %v959_v27, 0  ;;  %1146 = vmatpush.bf16.msra.mxu3 %v996_v53  ;;  %v3733_v27 = vld [vmem:[%s4924_s12 + $0xf0] sm:$0xff]  ;;  %v3731_v53 = vld [vmem:[%s4924_s12 + $0xe0] sm:$0xff] }
 0x51a   :  { %1108 = vmatpush.bf16.msrb.mxu1 %v990_v55  ;;  %v3716_v55 = vld [vmem:[%s4924_s12 + $0x68] sm:$0xff] }
 0x573   :  { %v807_v56 = vpop.xlane.xlu1 %806 }
 0x574   :  { %v817_v59 = vmul.f32 0.125, %v807_v56  ;;  %v999_v56 = vsel %vm169_vm2, %v962_v63, 0  ;;  %v3718_v63 = vld [vmem:[%s4924_s12 + $0x78] sm:$0xff] }
 0x575   :  { %1165 = vmatpush.bf16.msra.mxu0 %v999_v56  ;;  %v3724_v56 = vld [vmem:[%s4924_s12 + $0xa8] sm:$0xff] }
 0x576   :  { %v821_v3 = vadd.f32 1e-05, %v817_v59 }
 0x578   :  { %3874 = vrsqrt.f32 %v821_v3  ;;  %vm831_vm8 = vweird.f32 %v821_v3 }
 0x57b   :  { %v810_v13 = vpop.xlane.xlu2 %809 }
 0x57c   :  { %v818_v14 = vmul.f32 0.125, %v810_v13 }
 0x57e   :  { %v3875_v15 = vpop.eup %3874  ;;  %v822_v16 = vadd.f32 1e-05, %v818_v14 }
 0x57f   :  { %v826_v17 = vmul.f32 %v3875_v15, %v821_v3  ;;  %vm832_vm7 = vweird.f32 %v3875_v15 }
 0x580   :  { %3876 = vrsqrt.f32 %v822_v16  ;;  %vm833_vm9 = vmor %vm831_vm8, %vm832_vm7  ;;  %vm841_vm11 = vweird.f32 %v822_v16 }
 0x581   :  { %v827_v18 = vmul.f32 %v3875_v15, %v826_v17 }
 0x583   :  { %v828_v19 = vmul.f32 0.5, %v827_v18 }
 0x584   :  { %v813_v20 = vpop.xlane.xlu0 %812 }
 0x585   :  { %v829_v54 = vsub.f32 1.5, %v828_v19  ;;  %v819_v9 = vmul.f32 0.125, %v813_v20 }
 0x586   :  { %v3877_v23 = vpop.eup %3876 }
 0x587   :  { %v830_v24 = vmul.f32 %v3875_v15, %v829_v54  ;;  %v836_v26 = vmul.f32 %v3877_v23, %v822_v16  ;;  %v823_v62 = vadd.f32 1e-05, %v819_v9  ;;  %vm842_vm10 = vweird.f32 %v3877_v23 }
 0x588   :  { %vm843_vm12 = vmor %vm841_vm11, %vm842_vm10 }
 0x589   :  { %v834_v29 = vsel %vm833_vm9, %v3875_v15, %v830_v24  ;;  %v837_v45 = vmul.f32 %v3877_v23, %v836_v26  ;;  %3878 = vrsqrt.f32 %v823_v62  ;;  %vm851_vm14 = vweird.f32 %v823_v62 }
 0x58a   :  { %v865_v31 = vmul.f32 %v834_v29, %v4198_v22 }
 0x58b   :  { %v838_v30 = vmul.f32 0.5, %v837_v45 }
 0x58c   :  { %v816_v32 = vpop.xlane.xlu1 %815  ;;  %v873_v47 = vmul.f32 %v3837_v35, %v865_v31  ;;  %v893_v31 = vld [vmem:[%s4922_s10 + $0x30] sm:$0xff] }
 0x58d   :  { %v839_v36 = vsub.f32 1.5, %v838_v30  ;;  %v820_v37 = vmul.f32 0.125, %v816_v32  ;;  %v894_v32 = vld [vmem:[%s4922_s10 + $0x38] sm:$0xff]  ;;  %v952_v1 = vunpack.c.h.b16 %v893_v31 }
 0x58e   :  { %v4247_v59 = vadd.f32 %v3838_v34, %v873_v47  ;;  %v953_v33 = vunpack.c.l.b16 %v894_v32  ;;  %v3726_v47 = vld [vmem:[%s4924_s12 + $0xb8] sm:$0xff] }
 0x58f   :  { %v3879_v41 = vpop.eup %3878  ;;  %v840_v22 = vmul.f32 %v3877_v23, %v839_v36  ;;  %v824_v44 = vadd.f32 1e-05, %v820_v37  ;;  %v954_v36 = vunpack.c.h.b16 %v894_v32  ;;  %v968_v37 = vpack.c.b16 %v952_v1, %v952_v1 }
 0x590   :  { %v846_v28 = vmul.f32 %v3879_v41, %v823_v62  ;;  %vm852_vm13 = vweird.f32 %v3879_v41  ;;  %v969_v38 = vpack.c.b16 %v953_v33, %v953_v33  ;;  %v3738_v33 = vld [vmem:[%s4924_s12 + $0x118] sm:$0xff] }
 0x591   :  { %v844_v48 = vsel %vm843_vm12, %v3877_v23, %v840_v22  ;;  %3880 = vrsqrt.f32 %v824_v44  ;;  %vm853_vm15 = vmor %vm851_vm14, %vm852_vm13  ;;  %vm861_vm1 = vweird.f32 %v824_v44  ;;  %v970_v39 = vpack.c.b16 %v954_v36, %v954_v36 }
 0x592   :  { %v866_v51 = vmul.f32 %v844_v48, %v4203_v42  ;;  %v847_v52 = vmul.f32 %v3879_v41, %v846_v28  ;;  %v1017_v40 = vsel %vm169_vm2, %v968_v37, 0  ;;  %v3709_v28 = vld [vmem:[%s4924_s12 + $0x30] sm:$0xff]  ;;  %v3708_v48 = vld [vmem:[%s4924_s12 + $0x28] sm:$0xff]  ;;  %v3747_v37 = vld [vmem:[%s4924_s12 + $0x160] sm:$0xff] }
 0x594   :  { %v874_v57 = vmul.f32 %v3837_v35, %v866_v51  ;;  %v848_v58 = vmul.f32 0.5, %v847_v52  ;;  %v3725_v51 = vld [vmem:[%s4924_s12 + $0xb0] sm:$0xff]  ;;  %v3707_v52 = vld [vmem:[%s4924_s12 + $0x20] sm:$0xff] }
 0x596   :  { %v4249_v60 = vadd.f32 %v3838_v34, %v874_v57  ;;  %v849_v61 = vsub.f32 1.5, %v848_v58  ;;  %v3706_v57 = vld [vmem:[%s4924_s12 + $0x18] sm:$0xff] }
 0x597   :  { %v3881_v0 = vpop.eup %3880  ;;  %v3730_v58 = vld [vmem:[%s4924_s12 + $0xd8] sm:$0xff] }
 0x598   :  { %v4253_v42 = vpack.c.bf16 %v4249_v60, %v4247_v59  ;;  %v850_v2 = vmul.f32 %v3879_v41, %v849_v61  ;;  %v856_v3 = vmul.f32 %v3881_v0, %v824_v44  ;;  %vm862_vm0 = vweird.f32 %v3881_v0  ;;  %v3715_v61 = vld [vmem:[%s4924_s12 + $0x60] sm:$0xff] }
 0x599   :  { %vm863_vm4 = vmor %vm861_vm1, %vm862_vm0  ;;  %v1023_v44 = vsel %vm169_vm2, %v970_v39, 0  ;;  %v3737_v39 = vld [vmem:[%s4924_s12 + $0x110] sm:$0xff] }
 0x59a   :  { %v857_v4 = vmul.f32 %v3881_v0, %v856_v3  ;;  %3143 = vmatmul.msk.bf16.vlgmr.msra.gmra.mxu1 %vm162_vm3, %v4253_v42  ;;  %3145 = vmatmul.msk.bf16.vlgmr.msrb.gmra.mxu2 %vm162_vm3, %v4253_v42  ;;  %v854_v5 = vsel %vm853_vm15, %v3879_v41, %v850_v2  ;;  %v1020_v41 = vsel %vm169_vm2, %v969_v38, 0  ;;  %v3705_v2 = vld [vmem:[%s4924_s12 + $0x10] sm:$0xff]  ;;  %v3755_v38 = vld [vmem:[%s4924_s12 + $0x1a0] sm:$0xff] }
 0x59b   :  { %3147 = vmatmul.msk.bf16.vlgmr.msrb.gmra.mxu3 %vm162_vm3, %v4253_v42  ;;  %3149 = vmatmul.msk.bf16.vlgmr.msrb.gmra.mxu0 %vm162_vm3, %v4253_v42  ;;  %v867_v8 = vmul.f32 %v854_v5, %v4208_v49  ;;  %v891_v49 = vld [vmem:[%s4922_s10 + $0x20] sm:$0xff]  ;;  %v3729_v3 = vld [vmem:[%s4924_s12 + $0xd0] sm:$0xff]  ;;  %v3722_v5 = vld [vmem:[%s4924_s12 + $0x98] sm:$0xff] }
 0x59c   :  { %v858_v6 = vmul.f32 0.5, %v857_v4  ;;  %v948_v18 = vunpack.c.h.b16 %v891_v49  ;;  %v947_v20 = vunpack.c.l.b16 %v891_v49  ;;  %v3714_v4 = vld [vmem:[%s4924_s12 + $0x58] sm:$0xff] }
 0x59d   :  { %v875_v12 = vmul.f32 %v3837_v35, %v867_v8  ;;  %v3721_v8 = vld [vmem:[%s4924_s12 + $0x90] sm:$0xff]  ;;  %v3766_v49 = vld [vmem:[%s4924_s12 + $0x1f8] sm:$0xff] }
 0x59e   :  { %v859_v7 = vsub.f32 1.5, %v858_v6  ;;  %v964_v9 = vpack.c.b16 %v948_v18, %v948_v18  ;;  %v963_v24 = vpack.c.b16 %v947_v20, %v947_v20  ;;  %v3704_v6 = vld [vmem:[%s4924_s12 + $0x8] sm:$0xff]  ;;  %v3719_v18 = vld [vmem:[%s4924_s12 + $0x80] sm:$0xff]  ;;  %v3765_v20 = vld [vmem:[%s4924_s12 + $0x1f0] sm:$0xff] }
 0x59f   :  { %v4265_v15 = vadd.f32 %v3838_v34, %v875_v12  ;;  %v3712_v12 = vld [vmem:[%s4924_s12 + $0x48] sm:$0xff] }
 0x5a0   :  { %v860_v10 = vmul.f32 %v3881_v0, %v859_v7  ;;  %v1005_v62 = vsel %vm169_vm2, %v964_v9, 0  ;;  %v1002_v45 = vsel %vm169_vm2, %v963_v24, 0  ;;  %v3713_v7 = vld [vmem:[%s4924_s12 + $0x50] sm:$0xff]  ;;  %v3740_v9 = vld [vmem:[%s4924_s12 + $0x128] sm:$0xff] }
 0x5a1   :  { %1203 = vmatpush.bf16.msrb.mxu2 %v1005_v62  ;;  %1184 = vmatpush.bf16.msra.mxu1 %v1002_v45  ;;  %v3749_v24 = vld [vmem:[%s4924_s12 + $0x170] sm:$0xff]  ;;  %v3739_v62 = vld [vmem:[%s4924_s12 + $0x120] sm:$0xff]  ;;  %v3748_v45 = vld [vmem:[%s4924_s12 + $0x168] sm:$0xff] }
 0x5a2   :  { %v864_v11 = vsel %vm863_vm4, %v3881_v0, %v860_v10  ;;  %v3723_v0 = vld [vmem:[%s4924_s12 + $0xa0] sm:$0xff]  ;;  %vm3083_vm4 = vcmask 1041409  }
 0x5a3   :  { %v868_v13 = vmul.f32 %v864_v11, %v4213_v43  ;;  %v892_v43 = vld [vmem:[%s4922_s10 + $0x28] sm:$0xff]  ;;  %v3703_v10 = vld [vmem:[%s4924_s12] sm:$0xff] }
 0x5a4   :  { %v949_v19 = vunpack.c.l.b16 %v892_v43  ;;  %v950_v54 = vunpack.c.h.b16 %v892_v43  ;;  %v3727_v11 = vld [vmem:[%s4924_s12 + $0xc0] sm:$0xff] }
 0x5a5   :  { %v876_v14 = vmul.f32 %v3837_v35, %v868_v13  ;;  %v951_v35 = vunpack.c.l.b16 %v893_v31  ;;  %v3720_v13 = vld [vmem:[%s4924_s12 + $0x88] sm:$0xff]  ;;  %v3711_v43 = vld [vmem:[%s4924_s12 + $0x40] sm:$0xff] }
 0x5a6   :  { %v965_v23 = vpack.c.b16 %v949_v19, %v949_v19  ;;  %v966_v26 = vpack.c.b16 %v950_v54, %v950_v54  ;;  %v3741_v19 = vld [vmem:[%s4924_s12 + $0x130] sm:$0xff]  ;;  %v3750_v54 = vld [vmem:[%s4924_s12 + $0x178] sm:$0xff]  ;;  %v4490_v31 = vld [vmem:[%s4923_s11] sm:$0xff] }
 0x5a7   :  { %v4267_v16 = vadd.f32 %v3838_v34, %v876_v14  ;;  %v967_v21 = vpack.c.b16 %v951_v35, %v951_v35  ;;  %v3717_v34 = vld [vmem:[%s4924_s12 + $0x70] sm:$0xff]  ;;  %v3742_v14 = vld [vmem:[%s4924_s12 + $0x138] sm:$0xff]  ;;  %v4499_v36 = vperm.slane %v4490_v31, 0 }
 0x5a8   :  { %v1008_v29 = vsel %vm169_vm2, %v965_v23, 0  ;;  %v1011_v30 = vsel %vm169_vm2, %v966_v26, 0  ;;  %v3764_v23 = vld [vmem:[%s4924_s12 + $0x1e8] sm:$0xff]  ;;  %v3757_v26 = vld [vmem:[%s4924_s12 + $0x1b0] sm:$0xff]  ;;  %v3762_v35 = vld [vmem:[%s4924_s12 + $0x1d8] sm:$0xff] }
 0x5a9   :  { %v4271_v17 = vpack.c.bf16 %v4267_v16, %v4265_v15  ;;  %1222 = vmatpush.bf16.msrb.mxu3 %v1008_v29  ;;  %1241 = vmatpush.bf16.msrb.mxu0 %v1011_v30  ;;  %v1014_v22 = vsel %vm169_vm2, %v967_v21, 0  ;;  %v3763_v29 = vld [vmem:[%s4924_s12 + $0x1e0] sm:$0xff]  ;;  %v3756_v30 = vld [vmem:[%s4924_s12 + $0x1a8] sm:$0xff]  ;;  %v4508_v21 = vperm.slane %v4490_v31, 3 }
 0x5ab   :  { %3144 = vmatmul.msk.bf16.gmra.mxu1 %vm162_vm3, %v4271_v17  ;;  %3146 = vmatmul.msk.bf16.gmra.mxu2 %vm162_vm3, %v4271_v17 }
 0x5ac   :  { %3148 = vmatmul.msk.bf16.gmra.mxu3 %vm162_vm3, %v4271_v17  ;;  %3150 = vmatmul.msk.bf16.gmra.mxu0 %vm162_vm3, %v4271_v17 }
 0x5bb   :  { %3151 = vmatmul.msk.bf16.vlgmr.msrb.gmra.mxu1 %vm162_vm3, %v4253_v42  ;;  %3153 = vmatmul.msk.bf16.vlgmr.msra.gmra.mxu2 %vm162_vm3, %v4253_v42 }
 0x5bc   :  { %3155 = vmatmul.msk.bf16.vlgmr.msra.gmra.mxu3 %vm162_vm3, %v4253_v42  ;;  %3157 = vmatmul.msk.bf16.vlgmr.msra.gmra.mxu0 %vm162_vm3, %v4253_v42 }
 0x5bd   :  { %1279 = vmatpush.bf16.msra.mxu2 %v1017_v40  ;;  %1298 = vmatpush.bf16.msra.mxu3 %v1020_v41  ;;  %v3761_v40 = vld [vmem:[%s4924_s12 + $0x1d0] sm:$0xff] }
 0x5be   :  { %1260 = vmatpush.bf16.msrb.mxu1 %v1014_v22  ;;  %1317 = vmatpush.bf16.msra.mxu0 %v1023_v44 }
 0x5cb   :  { %3152 = vmatmul.msk.bf16.gmra.mxu1 %vm162_vm3, %v4271_v17  ;;  %3154 = vmatmul.msk.bf16.gmra.mxu2 %vm162_vm3, %v4271_v17 }
 0x5cc   :  { %3156 = vmatmul.msk.bf16.gmra.mxu3 %vm162_vm3, %v4271_v17  ;;  %3158 = vmatmul.msk.bf16.gmra.mxu0 %vm162_vm3, %v4271_v17 }
 0x5db   :  { %3159 = vmatmul.msk.bf16.vlgmr.msra.gmra.mxu1 %vm162_vm3, %v4253_v42  ;;  %3161 = vmatmul.msk.bf16.vlgmr.msrb.gmra.mxu2 %vm162_vm3, %v4253_v42 }
 0x5dc   :  { %3163 = vmatmul.msk.bf16.vlgmr.msrb.gmra.mxu3 %vm162_vm3, %v4253_v42  ;;  %3165 = vmatmul.msk.bf16.vlgmr.msrb.gmra.mxu0 %vm162_vm3, %v4253_v42 }
 0x5dd   :  { %2453 = vmatpush.bf16.msra.mxu1 %v3710_v46  ;;  %2510 = vmatpush.bf16.msrb.mxu0 %v3734_v25  ;;  %v3746_v46 = vld [vmem:[%s4924_s12 + $0x158] sm:$0xff] }
 0x5de   :  { %2472 = vmatpush.bf16.msrb.mxu2 %v3718_v63  ;;  %2491 = vmatpush.bf16.msrb.mxu3 %v3726_v47  ;;  %v3754_v25 = vld [vmem:[%s4924_s12 + $0x198] sm:$0xff]  ;;  %v4525_v63 = vperm.slane %v4490_v31, 1 }
 0x5e1   :  { %2454 = vmatpush.bf16.msra.mxu1 %v3709_v28  ;;  %2511 = vmatpush.bf16.msrb.mxu0 %v3733_v27 }
 0x5e2   :  { %2473 = vmatpush.bf16.msrb.mxu2 %v3717_v34  ;;  %2492 = vmatpush.bf16.msrb.mxu3 %v3725_v51  ;;  %v3760_v34 = vld [vmem:[%s4924_s12 + $0x1c8] sm:$0xff]  ;;  %v4535_v51 = vperm.slane %v4490_v31, 2 }
 0x5e5   :  { %2455 = vmatpush.bf16.msra.mxu1 %v3708_v48  ;;  %2512 = vmatpush.bf16.msrb.mxu0 %v3732_v50  ;;  %v3736_v50 = vld [vmem:[%s4924_s12 + $0x108] sm:$0xff] }
 0x5e6   :  { %2474 = vmatpush.bf16.msrb.mxu2 %v3716_v55  ;;  %2493 = vmatpush.bf16.msrb.mxu3 %v3724_v56  ;;  %v3745_v56 = vld [vmem:[%s4924_s12 + $0x150] sm:$0xff] }
 0x5e9   :  { %2456 = vmatpush.bf16.msra.mxu1 %v3707_v52  ;;  %2513 = vmatpush.bf16.msrb.mxu0 %v3731_v53 }
 0x5ea   :  { %2475 = vmatpush.bf16.msrb.mxu2 %v3715_v61  ;;  %2494 = vmatpush.bf16.msrb.mxu3 %v3723_v0 }
 0x5eb   :  { %3160 = vmatmul.msk.bf16.gmra.mxu1 %vm162_vm3, %v4271_v17  ;;  %3162 = vmatmul.msk.bf16.gmra.mxu2 %vm162_vm3, %v4271_v17 }
 0x5ec   :  { %3164 = vmatmul.msk.bf16.gmra.mxu3 %vm162_vm3, %v4271_v17  ;;  %3166 = vmatmul.msk.bf16.gmra.mxu0 %vm162_vm3, %v4271_v17 }
 0x5ed   :  { %2457 = vmatpush.bf16.msra.mxu1 %v3706_v57  ;;  %2514 = vmatpush.bf16.msrb.mxu0 %v3730_v58  ;;  %v3753_v57 = vld [vmem:[%s4924_s12 + $0x190] sm:$0xff] }
 0x5ee   :  { %2476 = vmatpush.bf16.msrb.mxu2 %v3714_v4  ;;  %2495 = vmatpush.bf16.msrb.mxu3 %v3722_v5  ;;  %v3759_v4 = vld [vmem:[%s4924_s12 + $0x1c0] sm:$0xff] }
 0x5f1   :  { %2458 = vmatpush.bf16.msra.mxu1 %v3705_v2  ;;  %2515 = vmatpush.bf16.msrb.mxu0 %v3729_v3  ;;  %v3735_v3 = vld [vmem:[%s4924_s12 + $0x100] sm:$0xff] }
 0x5f2   :  { %2477 = vmatpush.bf16.msrb.mxu2 %v3713_v7  ;;  %2496 = vmatpush.bf16.msrb.mxu3 %v3721_v8 }
 0x5f5   :  { %2459 = vmatpush.bf16.msra.mxu1 %v3704_v6 }
 0x5f6   :  { %2478 = vmatpush.bf16.msrb.mxu2 %v3712_v12  ;;  %2497 = vmatpush.bf16.msrb.mxu3 %v3720_v13 }
 0x5f9   :  { %2460 = vmatpush.bf16.msra.mxu1 %v3703_v10  ;;  %v3744_v10 = vld [vmem:[%s4924_s12 + $0x148] sm:$0xff] }
 0x5fa   :  { %2479 = vmatpush.bf16.msrb.mxu2 %v3711_v43  ;;  %2498 = vmatpush.bf16.msrb.mxu3 %v3719_v18  ;;  %v3774_v43 = vld [vmem:[%s4924_s12 + $0x238] sm:$0xff] }
 0x5fb   :  { %3167 = vmatmul.msk.bf16.vlgmr.msrb.gmra.mxu1 %vm162_vm3, %v4253_v42  ;;  %3169 = vmatmul.msk.bf16.vlgmr.msra.gmra.mxu2 %vm162_vm3, %v4253_v42  ;;  %v3798_v18 = vld [vmem:[%s4924_s12 + $0x2f8] sm:$0xff] }
 0x5fc   :  { %3171 = vmatmul.msk.bf16.vlgmr.msra.gmra.mxu3 %vm162_vm3, %v4253_v42  ;;  %3173 = vmatmul.msk.bf16.vlgmr.msra.gmra.mxu0 %vm162_vm3, %v4253_v42  ;;  %v3728_v42 = vld [vmem:[%s4924_s12 + $0xc8] sm:$0xff] }
 0x5fd   :  { %2516 = vmatpush.bf16.msrb.mxu0 %v3728_v42  ;;  %2529 = vmatpush.bf16.msrb.mxu1 %v3742_v14 }
 0x5fe   :  { %2548 = vmatpush.bf16.msra.mxu2 %v3750_v54 }
 0x601   :  { %2517 = vmatpush.bf16.msrb.mxu0 %v3727_v11  ;;  %2530 = vmatpush.bf16.msrb.mxu1 %v3741_v19  ;;  %v3752_v11 = vld [vmem:[%s4924_s12 + $0x188] sm:$0xff] }
 0x602   :  { %2549 = vmatpush.bf16.msra.mxu2 %v3749_v24 }
 0x605   :  { %2586 = vmatpush.bf16.msra.mxu0 %v3766_v49  ;;  %2531 = vmatpush.bf16.msrb.mxu1 %v3740_v9  ;;  %v3743_v9 = vld [vmem:[%s4924_s12 + $0x140] sm:$0xff] }
 0x606   :  { %2550 = vmatpush.bf16.msra.mxu2 %v3748_v45  ;;  %v3782_v45 = vld [vmem:[%s4924_s12 + $0x278] sm:$0xff] }
 0x609   :  { %2587 = vmatpush.bf16.msra.mxu0 %v3765_v20  ;;  %2532 = vmatpush.bf16.msrb.mxu1 %v3739_v62  ;;  %v3797_v62 = vld [vmem:[%s4924_s12 + $0x2f0] sm:$0xff] }
 0x60a   :  { %2551 = vmatpush.bf16.msra.mxu2 %v3747_v37  ;;  %v3772_v37 = vld [vmem:[%s4924_s12 + $0x228] sm:$0xff] }
 0x60b   :  { %3168 = vmatmul.msk.bf16.gmra.mxu1 %vm162_vm3, %v4271_v17  ;;  %3170 = vmatmul.msk.bf16.gmra.mxu2 %vm162_vm3, %v4271_v17 }
 0x60c   :  { %3172 = vmatmul.msk.bf16.gmra.mxu3 %vm162_vm3, %v4271_v17  ;;  %3174 = vmatmul.msk.bf16.gmra.mxu0 %vm162_vm3, %v4271_v17  ;;  %v3758_v17 = vld [vmem:[%s4924_s12 + $0x1b8] sm:$0xff] }
 0x60d   :  { %2567 = vmatpush.bf16.msra.mxu3 %v3758_v17  ;;  %2588 = vmatpush.bf16.msra.mxu0 %v3764_v23  ;;  %v3751_v23 = vld [vmem:[%s4924_s12 + $0x180] sm:$0xff] }
 0x60e   :  { %2533 = vmatpush.bf16.msrb.mxu1 %v3738_v33  ;;  %2552 = vmatpush.bf16.msra.mxu2 %v3746_v46 }
 0x611   :  { %2568 = vmatpush.bf16.msra.mxu3 %v3757_v26  ;;  %2589 = vmatpush.bf16.msra.mxu0 %v3763_v29  ;;  %v3773_v26 = vld [vmem:[%s4924_s12 + $0x230] sm:$0xff] }
 0x612   :  { %2534 = vmatpush.bf16.msrb.mxu1 %v3737_v39  ;;  %2553 = vmatpush.bf16.msra.mxu2 %v3745_v56 }
 0x615   :  { %2569 = vmatpush.bf16.msra.mxu3 %v3756_v30  ;;  %2590 = vmatpush.bf16.msra.mxu0 %v3762_v35  ;;  %v3790_v30 = vld [vmem:[%s4924_s12 + $0x2b8] sm:$0xff] }
 0x616   :  { %2535 = vmatpush.bf16.msrb.mxu1 %v3736_v50  ;;  %2554 = vmatpush.bf16.msra.mxu2 %v3744_v10  ;;  %v4632_v10 = vperm.slane %v4490_v31, 7 }
 0x617   :  { %v1034_v32 = vpop.f32.mrf.mxu1 }
 0x618   :  { %v1091_v1 = vpop.f32.mrf.mxu0  ;;  %v1035_v22 = vadd.f32 %v1034_v32, %v4499_v36 }
 0x619   :  { %2570 = vmatpush.bf16.msra.mxu3 %v3755_v38  ;;  %2591 = vmatpush.bf16.msra.mxu0 %v3761_v40  ;;  %v1092_v28 = vadd.f32 %v1091_v1, %v4508_v21  ;;  %v3796_v38 = vld [vmem:[%s4924_s12 + $0x2e8] sm:$0xff] }
 0x61a   :  { %v1329_v53 = vmax.f32 %v1035_v22, 0.0  ;;  %2536 = vmatpush.bf16.msrb.mxu1 %v3735_v3  ;;  %2555 = vmatpush.bf16.msra.mxu2 %v3743_v9  ;;  %v3781_v22 = vld [vmem:[%s4924_s12 + $0x270] sm:$0xff]  ;;  %v3792_v9 = vld [vmem:[%s4924_s12 + $0x2c8] sm:$0xff] }
 0x61b   :  { %v1332_v58 = vmax.f32 %v1092_v28, 0.0 }
 0x61d   :  { %v1053_v41 = vpop.f32.mrf.mxu2  ;;  %2571 = vmatpush.bf16.msra.mxu3 %v3754_v25  ;;  %2592 = vmatpush.bf16.msra.mxu0 %v3760_v34 }
 0x61e   :  { %v1072_v44 = vpop.f32.mrf.mxu3  ;;  %v1054_v0 = vadd.f32 %v1053_v41, %v4525_v63 }
 0x61f   :  { %v1036_v27 = vpop.f32.mrf.mxu1  ;;  %v1073_v5 = vadd.f32 %v1072_v44, %v4535_v51  ;;  %v3789_v44 = vld [vmem:[%s4924_s12 + $0x2b0] sm:$0xff] }
 0x620   :  { %v1037_v47 = vadd.f32 %v1036_v27, %v4499_v36  ;;  %v1093_v48 = vpop.f32.mrf.mxu0  ;;  %v1330_v13 = vmax.f32 %v1054_v0, 0.0  ;;  %v3770_v0 = vld [vmem:[%s4924_s12 + $0x218] sm:$0xff] }
 0x621   :  { %v1094_v52 = vadd.f32 %v1093_v48, %v4508_v21  ;;  %2572 = vmatpush.bf16.msra.mxu3 %v3753_v57  ;;  %2593 = vmatpush.bf16.msra.mxu0 %v3759_v4  ;;  %v1331_v19 = vmax.f32 %v1073_v5, 0.0 }
 0x622   :  { %v1345_v55 = vmax.f32 %v1037_v47, 0.0 }
 0x623   :  { %v1348_v61 = vmax.f32 %v1094_v52, 0.0 }
 0x624   :  { %v1393_v2 = vpack.c.bf16 %v1345_v55, %v1329_v53  ;;  %v3780_v53 = vld [vmem:[%s4924_s12 + $0x268] sm:$0xff] }
 0x625   :  { %v1396_v6 = vpack.c.bf16 %v1348_v61, %v1332_v58  ;;  %v1055_v42 = vpop.f32.mrf.mxu2  ;;  %2573 = vmatpush.bf16.msra.mxu3 %v3752_v11  ;;  %v3788_v55 = vld [vmem:[%s4924_s12 + $0x2a8] sm:$0xff] }
 0x626   :  { %v1056_v7 = vadd.f32 %v1055_v42, %v4525_v63  ;;  %v1074_v8 = vpop.f32.mrf.mxu3  ;;  %2461 = vmatmul.bf16.vlgmr.msra.gmra.mxu1 %v1393_v2  ;;  %v3794_v2 = vld [vmem:[%s4924_s12 + $0x2d8] sm:$0xff]  ;;  %v3787_v42 = vld [vmem:[%s4924_s12 + $0x2a0] sm:$0xff] }
 0x627   :  { %v1075_v12 = vadd.f32 %v1074_v8, %v4535_v51  ;;  %2518 = vmatmul.bf16.vlgmr.msrb.gmra.mxu0 %v1396_v6  ;;  %2605 = vmatpush.bf16.msra.mxu1 %v3774_v43  ;;  %v3786_v43 = vld [vmem:[%s4924_s12 + $0x298] sm:$0xff] }
 0x628   :  { %v1346_v14 = vmax.f32 %v1056_v7, 0.0  ;;  %v1039_v49 = vpop.f32.mrf.mxu1  ;;  %2662 = vmatpush.bf16.msrb.mxu0 %v3798_v18  ;;  %v4629_v7 = vperm.slane %v4490_v31, 4 }
 0x629   :  { %v1347_v20 = vmax.f32 %v1075_v12, 0.0  ;;  %v1096_v54 = vpop.f32.mrf.mxu0  ;;  %2574 = vmatpush.bf16.msra.mxu3 %v3751_v23  ;;  %v1040_v32 = vadd.f32 %v1039_v49, %v4499_v36  ;;  %v3769_v12 = vld [vmem:[%s4924_s12 + $0x210] sm:$0xff]  ;;  %v3778_v49 = vld [vmem:[%s4924_s12 + $0x258] sm:$0xff]  ;;  %v4655_v23 = vperm.slane %v4490_v31, 5 }
 0x62a   :  { %v1394_v17 = vpack.c.bf16 %v1346_v14, %v1330_v13  ;;  %v1097_v33 = vadd.f32 %v1096_v54, %v4508_v21  ;;  %v3793_v13 = vld [vmem:[%s4924_s12 + $0x2d0] sm:$0xff] }
 0x62b   :  { %v1395_v24 = vpack.c.bf16 %v1347_v20, %v1331_v19  ;;  %2606 = vmatpush.bf16.msra.mxu1 %v3773_v26  ;;  %v1361_v46 = vmax.f32 %v1040_v32, 0.0 }
 0x62c   :  { %2480 = vmatmul.bf16.vlgmr.msrb.gmra.mxu2 %v1394_v17  ;;  %2663 = vmatpush.bf16.msrb.mxu0 %v3797_v62  ;;  %v1364_v28 = vmax.f32 %v1097_v33, 0.0  ;;  %v3768_v17 = vld [vmem:[%s4924_s12 + $0x208] sm:$0xff]  ;;  %v4659_v62 = vperm.slane %v4490_v31, 6  ;;  %v3767_v31 = vld [vmem:[%s4924_s12 + $0x200] sm:$0xff] }
 0x62d   :  { %2499 = vmatmul.bf16.vlgmr.msrb.gmra.mxu3 %v1395_v24  ;;  %2624 = vmatpush.bf16.msrb.mxu2 %v3782_v45  ;;  %v3777_v45 = vld [vmem:[%s4924_s12 + $0x250] sm:$0xff] }
 0x62e   :  { %v1058_v29 = vpop.f32.mrf.mxu2  ;;  %2643 = vmatpush.bf16.msrb.mxu3 %v3790_v30  ;;  %v3785_v30 = vld [vmem:[%s4924_s12 + $0x290] sm:$0xff] }
 0x62f   :  { %v1077_v1 = vpop.f32.mrf.mxu3  ;;  %2607 = vmatpush.bf16.msra.mxu1 %v3772_v37  ;;  %v1059_v47 = vadd.f32 %v1058_v29, %v4525_v63  ;;  %v3791_v37 = vld [vmem:[%s4924_s12 + $0x2c0] sm:$0xff] }
 0x630   :  { %v1041_v35 = vpop.f32.mrf.mxu1  ;;  %2664 = vmatpush.bf16.msrb.mxu0 %v3796_v38  ;;  %v1078_v50 = vadd.f32 %v1077_v1, %v4535_v51 }
 0x631   :  { %v1042_v39 = vadd.f32 %v1041_v35, %v4499_v36  ;;  %v1098_v40 = vpop.f32.mrf.mxu0  ;;  %2625 = vmatpush.bf16.msrb.mxu2 %v3781_v22  ;;  %v3771_v36 = vld [vmem:[%s4924_s12 + $0x220] sm:$0xff]  ;;  %v1362_v3 = vmax.f32 %v1059_v47, 0.0  ;;  %v3830_v47 = vld [vmem:[%s4924_s12 + $0x3f8] sm:$0xff] }
 0x632   :  { %v1099_v41 = vadd.f32 %v1098_v40, %v4508_v21  ;;  %2644 = vmatpush.bf16.msrb.mxu3 %v3789_v44  ;;  %v3795_v21 = vld [vmem:[%s4924_s12 + $0x2e0] sm:$0xff]  ;;  %v3776_v44 = vld [vmem:[%s4924_s12 + $0x248] sm:$0xff] }
 0x633   :  { %v1377_v25 = vmax.f32 %v1042_v39, 0.0  ;;  %2608 = vmatpush.bf16.msra.mxu1 %v3771_v36 }
 0x634   :  { %v1380_v27 = vmax.f32 %v1099_v41, 0.0  ;;  %2665 = vmatpush.bf16.msrb.mxu0 %v3795_v21  ;;  %v3806_v21 = vld [vmem:[%s4924_s12 + $0x338] sm:$0xff] }
 0x635   :  { %v1409_v48 = vpack.c.bf16 %v1377_v25, %v1361_v46  ;;  %2626 = vmatpush.bf16.msrb.mxu2 %v3780_v53  ;;  %v3784_v46 = vld [vmem:[%s4924_s12 + $0x288] sm:$0xff] }
 0x636   :  { %v1060_v34 = vpop.f32.mrf.mxu2  ;;  %v1412_v52 = vpack.c.bf16 %v1380_v27, %v1364_v28  ;;  %2645 = vmatpush.bf16.msrb.mxu3 %v3788_v55  ;;  %v3775_v55 = vld [vmem:[%s4924_s12 + $0x240] sm:$0xff] }
 0x637   :  { %v1061_v56 = vadd.f32 %v1060_v34, %v4525_v63  ;;  %v1079_v57 = vpop.f32.mrf.mxu3  ;;  %2466 = vmatmul.bf16.gmra.mxu1 %v1409_v48  ;;  %v1363_v63 = vmax.f32 %v1078_v50, 0.0 }
 0x638   :  { %v1080_v58 = vadd.f32 %v1079_v57, %v4535_v51  ;;  %2523 = vmatmul.bf16.gmra.mxu0 %v1412_v52  ;;  %v1110_v61 = vpop.f32.mrf.mxu1  ;;  %2609 = vmatpush.bf16.msra.mxu1 %v3770_v0  ;;  %v3779_v51 = vld [vmem:[%s4924_s12 + $0x260] sm:$0xff]  ;;  %v3829_v0 = vld [vmem:[%s4924_s12 + $0x3f0] sm:$0xff] }
 0x639   :  { %v1378_v4 = vmax.f32 %v1061_v56, 0.0  ;;  %v1167_v5 = vpop.f32.mrf.mxu0  ;;  %2666 = vmatpush.bf16.msrb.mxu0 %v3794_v2  ;;  %2627 = vmatpush.bf16.msrb.mxu2 %v3779_v51  ;;  %v1111_v18 = vadd.f32 %v1110_v61, %v4629_v7  ;;  %v3783_v56 = vld [vmem:[%s4924_s12 + $0x280] sm:$0xff]  ;;  %v3805_v61 = vld [vmem:[%s4924_s12 + $0x330] sm:$0xff] }
 0x63a   :  { %v1379_v6 = vmax.f32 %v1080_v58, 0.0  ;;  %2646 = vmatpush.bf16.msrb.mxu3 %v3787_v42  ;;  %v1168_v20 = vadd.f32 %v1167_v5, %v4632_v10  ;;  %v3804_v42 = vld [vmem:[%s4924_s12 + $0x328] sm:$0xff] }
 0x63b   :  { %v1410_v8 = vpack.c.bf16 %v1378_v4, %v1362_v3  ;;  %v1333_v32 = vmax.f32 %v1111_v18, 0.0  ;;  %v3814_v3 = vld [vmem:[%s4924_s12 + $0x378] sm:$0xff] }
 0x63c   :  { %v1411_v11 = vpack.c.bf16 %v1379_v6, %v1363_v63  ;;  %2610 = vmatpush.bf16.msra.mxu1 %v3769_v12  ;;  %v1336_v33 = vmax.f32 %v1168_v20, 0.0  ;;  %v3822_v4 = vld [vmem:[%s4924_s12 + $0x3b8] sm:$0xff] }
 0x63d   :  { %2485 = vmatmul.bf16.gmra.mxu2 %v1410_v8  ;;  %2667 = vmatpush.bf16.msrb.mxu0 %v3793_v13  ;;  %v3828_v8 = vld [vmem:[%s4924_s12 + $0x3e8] sm:$0xff] }
 0x63e   :  { %2504 = vmatmul.bf16.gmra.mxu3 %v1411_v11  ;;  %v1129_v14 = vpop.f32.mrf.mxu2  ;;  %2628 = vmatpush.bf16.msrb.mxu2 %v3778_v49  ;;  %v3821_v49 = vld [vmem:[%s4924_s12 + $0x3b0] sm:$0xff] }
 0x63f   :  { %v1148_v19 = vpop.f32.mrf.mxu3  ;;  %2647 = vmatpush.bf16.msrb.mxu3 %v3786_v43  ;;  %v1130_v38 = vadd.f32 %v1129_v14, %v4655_v23  ;;  %v3813_v14 = vld [vmem:[%s4924_s12 + $0x370] sm:$0xff] }
 0x640   :  { %v1112_v54 = vpop.f32.mrf.mxu1  ;;  %2611 = vmatpush.bf16.msra.mxu1 %v3768_v17  ;;  %v1149_v40 = vadd.f32 %v1148_v19, %v4659_v62 }
 0x641   :  { %v1113_v24 = vadd.f32 %v1112_v54, %v4629_v7  ;;  %v1169_v26 = vpop.f32.mrf.mxu0  ;;  %2668 = vmatpush.bf16.msrb.mxu0 %v3792_v9  ;;  %v1334_v48 = vmax.f32 %v1130_v38, 0.0 }
 0x642   :  { %v1170_v29 = vadd.f32 %v1169_v26, %v4632_v10  ;;  %2629 = vmatpush.bf16.msrb.mxu2 %v3777_v45  ;;  %v1335_v52 = vmax.f32 %v1149_v40, 0.0  ;;  %v3820_v45 = vld [vmem:[%s4924_s12 + $0x3a8] sm:$0xff] }
 0x643   :  { %v1349_v1 = vmax.f32 %v1113_v24, 0.0  ;;  %2648 = vmatpush.bf16.msrb.mxu3 %v3785_v30 }
 0x644   :  { %v1352_v35 = vmax.f32 %v1170_v29, 0.0  ;;  %2612 = vmatpush.bf16.msra.mxu1 %v3767_v31  ;;  %v3812_v29 = vld [vmem:[%s4924_s12 + $0x368] sm:$0xff]  ;;  %v3802_v31 = vld [vmem:[%s4924_s12 + $0x318] sm:$0xff] }
 0x645   :  { %v1397_v39 = vpack.c.bf16 %v1349_v1, %v1333_v32  ;;  %2669 = vmatpush.bf16.msrb.mxu0 %v3791_v37 }
 0x646   :  { %v1400_v41 = vpack.c.bf16 %v1352_v35, %v1336_v33  ;;  %v1131_v22 = vpop.f32.mrf.mxu2  ;;  %2630 = vmatpush.bf16.msrb.mxu2 %v3776_v44  ;;  %v4743_v33 = vld [vmem:[%s4923_s11 + $0x8] sm:$0xff] }
 0x647   :  { %v1132_v25 = vadd.f32 %v1131_v22, %v4655_v23  ;;  %v1150_v28 = vpop.f32.mrf.mxu3  ;;  %2537 = vmatmul.bf16.vlgmr.msrb.gmra.mxu1 %v1397_v39  ;;  %2649 = vmatpush.bf16.msrb.mxu3 %v3784_v46  ;;  %v3819_v22 = vld [vmem:[%s4924_s12 + $0x3a0] sm:$0xff]  ;;  %v4758_v44 = vperm.slane %v4743_v33, 0 }
 0x648   :  { %v1151_v27 = vadd.f32 %v1150_v28, %v4659_v62  ;;  %2594 = vmatmul.bf16.vlgmr.msra.gmra.mxu0 %v1400_v41  ;;  %v1115_v36 = vpop.f32.mrf.mxu1  ;;  %2681 = vmatpush.bf16.msrb.mxu1 %v3806_v21  ;;  %v3811_v41 = vld [vmem:[%s4924_s12 + $0x360] sm:$0xff] }
 0x649   :  { %v1350_v50 = vmax.f32 %v1132_v25, 0.0  ;;  %v1172_v34 = vpop.f32.mrf.mxu0  ;;  %2738 = vmatpush.bf16.msra.mxu0 %v3830_v47  ;;  %v1116_v5 = vadd.f32 %v1115_v36, %v4629_v7  ;;  %v4761_v25 = vperm.slane %v4743_v33, 3  ;;  %v3825_v36 = vld [vmem:[%s4924_s12 + $0x3d0] sm:$0xff]  ;;  %v3810_v47 = vld [vmem:[%s4924_s12 + $0x358] sm:$0xff] }
 0x64a   :  { %v1351_v53 = vmax.f32 %v1151_v27, 0.0  ;;  %2631 = vmatpush.bf16.msrb.mxu2 %v3775_v55  ;;  %v1173_v6 = vadd.f32 %v1172_v34, %v4632_v10  ;;  %v3801_v27 = vld [vmem:[%s4924_s12 + $0x310] sm:$0xff]  ;;  %v3800_v55 = vld [vmem:[%s4924_s12 + $0x308] sm:$0xff] }
 0x64b   :  { %v1398_v57 = vpack.c.bf16 %v1350_v50, %v1334_v48  ;;  %2650 = vmatpush.bf16.msrb.mxu3 %v3783_v56  ;;  %v1365_v43 = vmax.f32 %v1116_v5, 0.0  ;;  %v3818_v48 = vld [vmem:[%s4924_s12 + $0x398] sm:$0xff]  ;;  %v3824_v56 = vld [vmem:[%s4924_s12 + $0x3c8] sm:$0xff] }
 0x64c   :  { %v1399_v58 = vpack.c.bf16 %v1351_v53, %v1335_v52  ;;  %2682 = vmatpush.bf16.msrb.mxu1 %v3805_v61  ;;  %v1368_v19 = vmax.f32 %v1173_v6, 0.0 }
 0x64d   :  { %2556 = vmatmul.bf16.vlgmr.msra.gmra.mxu2 %v1398_v57  ;;  %2739 = vmatpush.bf16.msra.mxu0 %v3829_v0  ;;  %v4784_v57 = vperm.slane %v4743_v33, 1  ;;  %v4788_v0 = vperm.slane %v4743_v33, 2 }
 0x64e   :  { %2575 = vmatmul.bf16.vlgmr.msra.gmra.mxu3 %v1399_v58  ;;  %v1134_v2 = vpop.f32.mrf.mxu2  ;;  %2700 = vmatpush.bf16.msra.mxu2 %v3814_v3  ;;  %v3809_v3 = vld [vmem:[%s4924_s12 + $0x350] sm:$0xff] }
 0x64f   :  { %v1153_v63 = vpop.f32.mrf.mxu3  ;;  %2719 = vmatpush.bf16.msra.mxu3 %v3822_v4  ;;  %v1135_v54 = vadd.f32 %v1134_v2, %v4655_v23  ;;  %v3817_v4 = vld [vmem:[%s4924_s12 + $0x390] sm:$0xff] }
 0x650   :  { %v1117_v51 = vpop.f32.mrf.mxu1  ;;  %2683 = vmatpush.bf16.msrb.mxu1 %v3804_v42  ;;  %v1154_v9 = vadd.f32 %v1153_v63, %v4659_v62  ;;  %v3799_v42 = vld [vmem:[%s4924_s12 + $0x300] sm:$0xff] }
 0x651   :  { %v1118_v11 = vadd.f32 %v1117_v51, %v4629_v7  ;;  %v1174_v12 = vpop.f32.mrf.mxu0  ;;  %2740 = vmatpush.bf16.msra.mxu0 %v3828_v8  ;;  %v3803_v7 = vld [vmem:[%s4924_s12 + $0x320] sm:$0xff]  ;;  %v1366_v37 = vmax.f32 %v1135_v54, 0.0 }
 0x652   :  { %v1175_v13 = vadd.f32 %v1174_v12, %v4632_v10  ;;  %2701 = vmatpush.bf16.msra.mxu2 %v3813_v14  ;;  %v3827_v10 = vld [vmem:[%s4924_s12 + $0x3e0] sm:$0xff] }
 0x653   :  { %v1381_v18 = vmax.f32 %v1118_v11, 0.0  ;;  %2720 = vmatpush.bf16.msra.mxu3 %v3821_v49  ;;  %v3823_v8 = vld [vmem:[%s4924_s12 + $0x3c0] sm:$0xff] }
 0x654   :  { %v1384_v20 = vmax.f32 %v1175_v13, 0.0  ;;  %2684 = vmatpush.bf16.msrb.mxu1 %v3803_v7 }
 0x655   :  { %v1413_v17 = vpack.c.bf16 %v1381_v18, %v1365_v43  ;;  %2741 = vmatpush.bf16.msra.mxu0 %v3827_v10  ;;  %v3808_v43 = vld [vmem:[%s4924_s12 + $0x348] sm:$0xff] }
 0x656   :  { %v1136_v24 = vpop.f32.mrf.mxu2  ;;  %v1416_v26 = vpack.c.bf16 %v1384_v20, %v1368_v19  ;;  %2702 = vmatpush.bf16.msra.mxu2 %v3812_v29  ;;  %v3816_v18 = vld [vmem:[%s4924_s12 + $0x388] sm:$0xff]  ;;  %v3807_v29 = vld [vmem:[%s4924_s12 + $0x340] sm:$0xff] }
 0x657   :  { %v1137_v30 = vadd.f32 %v1136_v24, %v4655_v23  ;;  %v1155_v32 = vpop.f32.mrf.mxu3  ;;  %2542 = vmatmul.bf16.gmra.mxu1 %v1413_v17  ;;  %v3826_v23 = vld [vmem:[%s4924_s12 + $0x3d8] sm:$0xff]  ;;  %2721 = vmatpush.bf16.msra.mxu3 %v3820_v45  ;;  %v3815_v45 = vld [vmem:[%s4924_s12 + $0x380] sm:$0xff] }
 0x658   :  { %v1156_v1 = vadd.f32 %v1155_v32, %v4659_v62  ;;  %2599 = vmatmul.bf16.gmra.mxu0 %v1416_v26  ;;  %v1186_v35 = vpop.f32.mrf.mxu1  ;;  %v1367_v62 = vmax.f32 %v1154_v9, 0.0  ;;  %2685 = vmatpush.bf16.msrb.mxu1 %v3802_v31 }
 0x659   :  { %v1382_v38 = vmax.f32 %v1137_v30, 0.0  ;;  %v1243_v39 = vpop.f32.mrf.mxu0  ;;  %2742 = vmatpush.bf16.msra.mxu0 %v3826_v23  ;;  %v1187_v50 = vadd.f32 %v1186_v35, %v4758_v44 }
 0x65a   :  { %v1383_v40 = vmax.f32 %v1156_v1, 0.0  ;;  %2703 = vmatpush.bf16.msra.mxu2 %v3811_v41  ;;  %v1244_v52 = vadd.f32 %v1243_v39, %v4761_v25 }
 0x65b   :  { %v1414_v46 = vpack.c.bf16 %v1382_v38, %v1366_v37  ;;  %2722 = vmatpush.bf16.msra.mxu3 %v3819_v22  ;;  %v1337_v5 = vmax.f32 %v1187_v50, 0.0 }
 0x65c   :  { %v1415_v28 = vpack.c.bf16 %v1383_v40, %v1367_v62  ;;  %2686 = vmatpush.bf16.msrb.mxu1 %v3801_v27  ;;  %v1340_v6 = vmax.f32 %v1244_v52, 0.0 }
 0x65d   :  { %2561 = vmatmul.bf16.gmra.mxu2 %v1414_v46  ;;  %2743 = vmatpush.bf16.msra.mxu0 %v3825_v36 }
 0x65e   :  { %2580 = vmatmul.bf16.gmra.mxu3 %v1415_v28  ;;  %v1205_v21 = vpop.f32.mrf.mxu2  ;;  %2704 = vmatpush.bf16.msra.mxu2 %v3810_v47 }
 0x65f   :  { %v1224_v34 = vpop.f32.mrf.mxu3  ;;  %2723 = vmatpush.bf16.msra.mxu3 %v3818_v48  ;;  %v1206_v11 = vadd.f32 %v1205_v21, %v4784_v57 }
 0x660   :  { %v1188_v53 = vpop.f32.mrf.mxu1  ;;  %2687 = vmatpush.bf16.msrb.mxu1 %v3800_v55  ;;  %v1225_v13 = vadd.f32 %v1224_v34, %v4788_v0 }
 0x661   :  { %v1189_v58 = vadd.f32 %v1188_v53, %v4758_v44  ;;  %v1245_v61 = vpop.f32.mrf.mxu0  ;;  %2744 = vmatpush.bf16.msra.mxu0 %v3824_v56  ;;  %v1338_v54 = vmax.f32 %v1206_v11, 0.0 }
 0x662   :  { %v1246_v2 = vadd.f32 %v1245_v61, %v4761_v25  ;;  %2705 = vmatpush.bf16.msra.mxu2 %v3809_v3  ;;  %v1339_v24 = vmax.f32 %v1225_v13, 0.0  ;;  %v911_v61 = vperm.slane %v4743_v33, 4  ;;  %v914_v3 = vperm.slane %v4743_v33, 7 }
 0x663   :  { %v1353_v63 = vmax.f32 %v1189_v58, 0.0  ;;  %2724 = vmatpush.bf16.msra.mxu3 %v3817_v4 }
 0x664   :  { %v1356_v51 = vmax.f32 %v1246_v2, 0.0  ;;  %2688 = vmatpush.bf16.msrb.mxu1 %v3799_v42 }
 0x665   :  { %v1401_v12 = vpack.c.bf16 %v1353_v63, %v1337_v5  ;;  %2745 = vmatpush.bf16.msra.mxu0 %v3823_v8  ;;  %v913_v8 = vperm.slane %v4743_v33, 6 }
 0x666   :  { %v1404_v14 = vpack.c.bf16 %v1356_v51, %v1340_v6  ;;  %v1207_v49 = vpop.f32.mrf.mxu2  ;;  %2706 = vmatpush.bf16.msra.mxu2 %v3808_v43  ;;  %v912_v6 = vperm.slane %v4743_v33, 5 }
 0x667   :  { %v1208_v19 = vadd.f32 %v1207_v49, %v4784_v57  ;;  %v1226_v20 = vpop.f32.mrf.mxu3  ;;  %2613 = vmatmul.bf16.vlgmr.msra.gmra.mxu1 %v1401_v12  ;;  %2725 = vmatpush.bf16.msra.mxu3 %v3816_v18 }
 0x668   :  { %v1227_v7 = vadd.f32 %v1226_v20, %v4788_v0  ;;  %2670 = vmatmul.bf16.vlgmr.msrb.gmra.mxu0 %v1404_v14  ;;  %v1191_v10 = vpop.f32.mrf.mxu1 }
 0x669   :  { %v1354_v17 = vmax.f32 %v1208_v19, 0.0  ;;  %v1248_v9 = vpop.f32.mrf.mxu0  ;;  %v1192_v35 = vadd.f32 %v1191_v10, %v4758_v44 }
 0x66a   :  { %v1355_v26 = vmax.f32 %v1227_v7, 0.0  ;;  %2707 = vmatpush.bf16.msra.mxu2 %v3807_v29  ;;  %v1249_v23 = vadd.f32 %v1248_v9, %v4761_v25 }
 0x66b   :  { %v1402_v30 = vpack.c.bf16 %v1354_v17, %v1338_v54  ;;  %2726 = vmatpush.bf16.msra.mxu3 %v3815_v45  ;;  %v1369_v40 = vmax.f32 %v1192_v35, 0.0 }
 0x66c   :  { %v1403_v32 = vpack.c.bf16 %v1355_v26, %v1339_v24  ;;  %v1372_v22 = vmax.f32 %v1249_v23, 0.0 }
 0x66d   :  { %2632 = vmatmul.bf16.vlgmr.msrb.gmra.mxu2 %v1402_v30 }
 0x66e   :  { %2651 = vmatmul.bf16.vlgmr.msrb.gmra.mxu3 %v1403_v32  ;;  %v1210_v1 = vpop.f32.mrf.mxu2 }
 0x66f   :  { %v1229_v31 = vpop.f32.mrf.mxu3  ;;  %v1211_v28 = vadd.f32 %v1210_v1, %v4784_v57 }
 0x670   :  { %v1193_v37 = vpop.f32.mrf.mxu1  ;;  %v1230_v36 = vadd.f32 %v1229_v31, %v4788_v0 }
 0x671   :  { %v1194_v38 = vadd.f32 %v1193_v37, %v4758_v44  ;;  %v1250_v39 = vpop.f32.mrf.mxu0 }
 0x672   :  { %v1251_v62 = vadd.f32 %v1250_v39, %v4761_v25  ;;  %v1370_v25 = vmax.f32 %v1211_v28, 0.0  ;;  %v1371_v55 = vmax.f32 %v1230_v36, 0.0 }
 0x673   :  { %v1385_v41 = vmax.f32 %v1194_v38, 0.0 }
 0x674   :  { %v1388_v46 = vmax.f32 %v1251_v62, 0.0 }
 0x675   :  { %v1417_v27 = vpack.c.bf16 %v1385_v41, %v1369_v40 }
 0x676   :  { %v1420_v21 = vpack.c.bf16 %v1388_v46, %v1372_v22  ;;  %v1212_v47 = vpop.f32.mrf.mxu2 }
 0x677   :  { %v1213_v48 = vadd.f32 %v1212_v47, %v4784_v57  ;;  %v1231_v50 = vpop.f32.mrf.mxu3  ;;  %2618 = vmatmul.bf16.gmra.mxu1 %v1417_v27 }
 0x678   :  { %v1232_v44 = vadd.f32 %v1231_v50, %v4788_v0  ;;  %2675 = vmatmul.bf16.gmra.mxu0 %v1420_v21  ;;  %v1262_v34 = vpop.f32.mrf.mxu1 }
 0x679   :  { %v1386_v52 = vmax.f32 %v1213_v48, 0.0  ;;  %v1319_v53 = vpop.f32.mrf.mxu0  ;;  %v1263_v4 = vadd.f32 %v1262_v34, %v911_v61 }
 0x67a   :  { %v1387_v56 = vmax.f32 %v1232_v44, 0.0  ;;  %v1320_v63 = vadd.f32 %v1319_v53, %v914_v3 }
 0x67b   :  { %v1418_v58 = vpack.c.bf16 %v1386_v52, %v1370_v25  ;;  %v1341_v12 = vmax.f32 %v1263_v4, 0.0 }
 0x67c   :  { %v1419_v2 = vpack.c.bf16 %v1387_v56, %v1371_v55  ;;  %v1344_v14 = vmax.f32 %v1320_v63, 0.0 }
 0x67d   :  { %2637 = vmatmul.bf16.gmra.mxu2 %v1418_v58 }
 0x67e   :  { %2656 = vmatmul.bf16.gmra.mxu3 %v1419_v2  ;;  %v1281_v57 = vpop.f32.mrf.mxu2  ;;  %v3839_v2 = vld [vmem:[%s4925_s13] ss:$0 sm:$0xff] }
 0x67f   :  { %v1300_v5 = vpop.f32.mrf.mxu3  ;;  %v1282_v43 = vadd.f32 %v1281_v57, %v912_v6 }
 0x680   :  { %v1264_v0 = vpop.f32.mrf.mxu1  ;;  %v1301_v19 = vadd.f32 %v1300_v5, %v913_v8 }
 0x681   :  { %v1265_v51 = vadd.f32 %v1264_v0, %v911_v61  ;;  %v1321_v42 = vpop.f32.mrf.mxu0  ;;  %v1342_v24 = vmax.f32 %v1282_v43, 0.0 }
 0x682   :  { %v1322_v11 = vadd.f32 %v1321_v42, %v914_v3  ;;  %v1343_v33 = vmax.f32 %v1301_v19, 0.0 }
 0x683   :  { %v1357_v13 = vmax.f32 %v1265_v51, 0.0 }
 0x684   :  { %v1360_v49 = vmax.f32 %v1322_v11, 0.0 }
 0x685   :  { %v1405_v18 = vpack.c.bf16 %v1357_v13, %v1341_v12 }
 0x686   :  { %v1408_v20 = vpack.c.bf16 %v1360_v49, %v1344_v14  ;;  %v1283_v7 = vpop.f32.mrf.mxu2 }
 0x687   :  { %v1284_v10 = vadd.f32 %v1283_v7, %v912_v6  ;;  %v1302_v54 = vpop.f32.mrf.mxu3  ;;  %2689 = vmatmul.bf16.vlgmr.msrb.gmra.mxu1 %v1405_v18 }
 0x688   :  { %v1303_v17 = vadd.f32 %v1302_v54, %v913_v8  ;;  %2746 = vmatmul.bf16.vlgmr.msra.gmra.mxu0 %v1408_v20  ;;  %v1267_v9 = vpop.f32.mrf.mxu1 }
 0x689   :  { %v1358_v26 = vmax.f32 %v1284_v10, 0.0  ;;  %v1324_v29 = vpop.f32.mrf.mxu0  ;;  %v1268_v35 = vadd.f32 %v1267_v9, %v911_v61 }
 0x68a   :  { %v1359_v45 = vmax.f32 %v1303_v17, 0.0  ;;  %v1325_v23 = vadd.f32 %v1324_v29, %v914_v3 }
 0x68b   :  { %v1406_v30 = vpack.c.bf16 %v1358_v26, %v1342_v24  ;;  %v1373_v40 = vmax.f32 %v1268_v35, 0.0 }
 0x68c   :  { %v1407_v32 = vpack.c.bf16 %v1359_v45, %v1343_v33  ;;  %v1376_v22 = vmax.f32 %v1325_v23, 0.0 }
 0x68d   :  { %2708 = vmatmul.bf16.vlgmr.msra.gmra.mxu2 %v1406_v30 }
 0x68e   :  { %2727 = vmatmul.bf16.vlgmr.msra.gmra.mxu3 %v1407_v32  ;;  %v1286_v1 = vpop.f32.mrf.mxu2 }
 0x68f   :  { %v1305_v31 = vpop.f32.mrf.mxu3  ;;  %v1287_v28 = vadd.f32 %v1286_v1, %v912_v6 }
 0x690   :  { %v1269_v37 = vpop.f32.mrf.mxu1  ;;  %v1306_v36 = vadd.f32 %v1305_v31, %v913_v8 }
 0x691   :  { %v1270_v38 = vadd.f32 %v1269_v37, %v911_v61  ;;  %v1326_v39 = vpop.f32.mrf.mxu0  ;;  %v1374_v34 = vmax.f32 %v1287_v28, 0.0 }
 0x692   :  { %v1327_v62 = vadd.f32 %v1326_v39, %v914_v3  ;;  %v1375_v52 = vmax.f32 %v1306_v36, 0.0 }
 0x693   :  { %v1389_v41 = vmax.f32 %v1270_v38, 0.0 }
 0x694   :  { %v1392_v46 = vmax.f32 %v1327_v62, 0.0 }
 0x695   :  { %v1421_v27 = vpack.c.bf16 %v1389_v41, %v1373_v40 }
 0x696   :  { %v1424_v21 = vpack.c.bf16 %v1392_v46, %v1376_v22  ;;  %v1288_v47 = vpop.f32.mrf.mxu2 }
 0x697   :  { %v1289_v48 = vadd.f32 %v1288_v47, %v912_v6  ;;  %v1307_v50 = vpop.f32.mrf.mxu3  ;;  %2694 = vmatmul.bf16.gmra.mxu1 %v1421_v27 }
 0x698   :  { %v1308_v44 = vadd.f32 %v1307_v50, %v913_v8  ;;  %2751 = vmatmul.bf16.gmra.mxu0 %v1424_v21 }
 0x699   :  { %v1390_v25 = vmax.f32 %v1289_v48, 0.0 }
 0x69a   :  { %v1391_v53 = vmax.f32 %v1308_v44, 0.0 }
 0x69b   :  { %v1422_v55 = vpack.c.bf16 %v1390_v25, %v1374_v34 }
 0x69c   :  { %v1423_v56 = vpack.c.bf16 %v1391_v53, %v1375_v52 }
 0x69d   :  { %2713 = vmatmul.bf16.gmra.mxu2 %v1422_v55 }
 0x69e   :  { %2732 = vmatmul.bf16.gmra.mxu3 %v1423_v56 }
 0x6a3   :  { %v2462_v58 = vpop.f32.mrf.mxu1 }
 0x6a4   :  { %v2519_v61 = vpop.f32.mrf.mxu0  ;;  %v2463_v4 = vadd.f32 %v3839_v2, %v2462_v58 }
 0x6ab   :  { %v2464_v3 = vpop.f32.mrf.mxu1 }
 0x6ac   :  { %v2521_v57 = vpop.f32.mrf.mxu0  ;;  %v2465_v11 = vadd.f32 %v3839_v2, %v2464_v3 }
 0x6af   :  { %v2481_v5 = vpop.f32.mrf.mxu2 }
 0x6b0   :  { %v2482_v63 = vadd.f32 %v2481_v5, %v2463_v4  ;;  %v2500_v0 = vpop.f32.mrf.mxu3 }
 0x6b2   :  { %v2501_v6 = vadd.f32 %v2500_v0, %v2482_v63 }
 0x6b4   :  { %v2467_v51 = vpop.f32.mrf.mxu1  ;;  %v2520_v42 = vadd.f32 %v2519_v61, %v2501_v6 }
 0x6b5   :  { %v2524_v8 = vpop.f32.mrf.mxu0  ;;  %v2468_v20 = vadd.f32 %v3839_v2, %v2467_v51 }
 0x6b7   :  { %v2483_v12 = vpop.f32.mrf.mxu2 }
 0x6b8   :  { %v2484_v13 = vadd.f32 %v2483_v12, %v2465_v11  ;;  %v2502_v14 = vpop.f32.mrf.mxu3 }
 0x6ba   :  { %v2503_v49 = vadd.f32 %v2502_v14, %v2484_v13 }
 0x6bc   :  { %v2469_v43 = vpop.f32.mrf.mxu1  ;;  %v2522_v18 = vadd.f32 %v2521_v57, %v2503_v49 }
 0x6bd   :  { %v2526_v19 = vpop.f32.mrf.mxu0  ;;  %v2470_v29 = vadd.f32 %v3839_v2, %v2469_v43 }
 0x6c0   :  { %v2486_v7 = vpop.f32.mrf.mxu2 }
 0x6c1   :  { %v2487_v10 = vadd.f32 %v2486_v7, %v2468_v20  ;;  %v2505_v54 = vpop.f32.mrf.mxu3 }
 0x6c3   :  { %v2506_v17 = vadd.f32 %v2505_v54, %v2487_v10 }
 0x6c4   :  { %v2538_v9 = vpop.f32.mrf.mxu1 }
 0x6c5   :  { %v2595_v24 = vpop.f32.mrf.mxu0  ;;  %v2525_v26 = vadd.f32 %v2524_v8, %v2506_v17  ;;  %v2539_v52 = vadd.f32 %v2538_v9, %v2520_v42 }
 0x6c8   :  { %v2488_v33 = vpop.f32.mrf.mxu2 }
 0x6c9   :  { %v2489_v45 = vadd.f32 %v2488_v33, %v2470_v29  ;;  %v2507_v30 = vpop.f32.mrf.mxu3 }
 0x6cb   :  { %v2508_v32 = vadd.f32 %v2507_v30, %v2489_v45 }
 0x6cc   :  { %v2540_v1 = vpop.f32.mrf.mxu1 }
 0x6cd   :  { %v2597_v35 = vpop.f32.mrf.mxu0  ;;  %v2527_v31 = vadd.f32 %v2526_v19, %v2508_v32  ;;  %v2541_v3 = vadd.f32 %v2540_v1, %v2522_v18 }
 0x6d0   :  { %v2557_v23 = vpop.f32.mrf.mxu2 }
 0x6d1   :  { %v2576_v37 = vpop.f32.mrf.mxu3  ;;  %v2558_v55 = vadd.f32 %v2557_v23, %v2539_v52 }
 0x6d3   :  { %v2577_v2 = vadd.f32 %v2576_v37, %v2558_v55 }
 0x6d4   :  { %v2543_v38 = vpop.f32.mrf.mxu1 }
 0x6d5   :  { %v2600_v39 = vpop.f32.mrf.mxu0  ;;  %v2596_v5 = vadd.f32 %v2595_v24, %v2577_v2  ;;  %v2544_v12 = vadd.f32 %v2543_v38, %v2525_v26 }
 0x6d8   :  { %v2559_v62 = vpop.f32.mrf.mxu2 }
 0x6d9   :  { %v2578_v40 = vpop.f32.mrf.mxu3  ;;  %v2560_v4 = vadd.f32 %v2559_v62, %v2541_v3 }
 0x6db   :  { %v2579_v51 = vadd.f32 %v2578_v40, %v2560_v4 }
 0x6dc   :  { %v2545_v41 = vpop.f32.mrf.mxu1 }
 0x6dd   :  { %v2602_v22 = vpop.f32.mrf.mxu0  ;;  %v2598_v42 = vadd.f32 %v2597_v35, %v2579_v51  ;;  %v2546_v54 = vadd.f32 %v2545_v41, %v2527_v31 }
 0x6e0   :  { %v2562_v46 = vpop.f32.mrf.mxu2 }
 0x6e1   :  { %v2581_v28 = vpop.f32.mrf.mxu3  ;;  %v2563_v14 = vadd.f32 %v2562_v46, %v2544_v12 }
 0x6e3   :  { %v2582_v20 = vadd.f32 %v2581_v28, %v2563_v14 }
 0x6e4   :  { %v2614_v27 = vpop.f32.mrf.mxu1 }
 0x6e5   :  { %v2671_v36 = vpop.f32.mrf.mxu0  ;;  %v2615_v0 = vadd.f32 %v2614_v27, %v2596_v5  ;;  %v2601_v33 = vadd.f32 %v2600_v39, %v2582_v20 }
 0x6e8   :  { %v2564_v21 = vpop.f32.mrf.mxu2 }
 0x6e9   :  { %v2583_v47 = vpop.f32.mrf.mxu3  ;;  %v2565_v29 = vadd.f32 %v2564_v21, %v2546_v54 }
 0x6eb   :  { %v2584_v23 = vadd.f32 %v2583_v47, %v2565_v29 }
 0x6ec   :  { %v2616_v48 = vpop.f32.mrf.mxu1 }
 0x6ed   :  { %v2673_v50 = vpop.f32.mrf.mxu0  ;;  %v2617_v19 = vadd.f32 %v2616_v48, %v2598_v42  ;;  %v2603_v31 = vadd.f32 %v2602_v22, %v2584_v23 }
 0x6f0   :  { %v2633_v44 = vpop.f32.mrf.mxu2 }
 0x6f1   :  { %v2652_v34 = vpop.f32.mrf.mxu3  ;;  %v2634_v8 = vadd.f32 %v2633_v44, %v2615_v0 }
 0x6f3   :  { %v2653_v49 = vadd.f32 %v2652_v34, %v2634_v8 }
 0x6f4   :  { %v2619_v25 = vpop.f32.mrf.mxu1 }
 0x6f5   :  { %v2676_v58 = vpop.f32.mrf.mxu0  ;;  %v2672_v10 = vadd.f32 %v2671_v36, %v2653_v49  ;;  %v2620_v26 = vadd.f32 %v2619_v25, %v2601_v33 }
 0x6f8   :  { %v2635_v53 = vpop.f32.mrf.mxu2 }
 0x6f9   :  { %v2654_v56 = vpop.f32.mrf.mxu3  ;;  %v2636_v7 = vadd.f32 %v2635_v53, %v2617_v19 }
 0x6fb   :  { %v2655_v45 = vadd.f32 %v2654_v56, %v2636_v7 }
 0x6fc   :  { %v2621_v61 = vpop.f32.mrf.mxu1 }
 0x6fd   :  { %v2678_v6 = vpop.f32.mrf.mxu0  ;;  %v2674_v37 = vadd.f32 %v2673_v50, %v2655_v45  ;;  %v2622_v48 = vadd.f32 %v2621_v61, %v2603_v31 }
 0x700   :  { %v2638_v57 = vpop.f32.mrf.mxu2 }
 0x701   :  { %v2657_v63 = vpop.f32.mrf.mxu3  ;;  %v2639_v35 = vadd.f32 %v2638_v57, %v2620_v26 }
 0x703   :  { %v2658_v41 = vadd.f32 %v2657_v63, %v2639_v35 }
 0x704   :  { %v2690_v11 = vpop.f32.mrf.mxu1 }
 0x705   :  { %v2747_v18 = vpop.f32.mrf.mxu0  ;;  %v2691_v17 = vadd.f32 %v2690_v11, %v2672_v10  ;;  %v2677_v47 = vadd.f32 %v2676_v58, %v2658_v41 }
 0x708   :  { %v2640_v13 = vpop.f32.mrf.mxu2 }
 0x709   :  { %v2659_v43 = vpop.f32.mrf.mxu3  ;;  %v2641_v34 = vadd.f32 %v2640_v13, %v2622_v48 }
 0x70c   :  { %v2692_v9 = vpop.f32.mrf.mxu1 }
 0x70d   :  { %v2693_v62 = vadd.f32 %v2692_v9, %v2674_v37  ;;  %v2749_v46 = vpop.f32.mrf.mxu0 }
 0x710   :  { %v2709_v24 = vpop.f32.mrf.mxu2 }
 0x711   :  { %v2710_v30 = vadd.f32 %v2709_v24, %v2691_v17  ;;  %v2728_v32 = vpop.f32.mrf.mxu3 }
 0x713   :  { %v2729_v1 = vadd.f32 %v2728_v32, %v2710_v30 }
 0x714   :  { %v2695_v21 = vpop.f32.mrf.mxu1 }
 0x715   :  { %v2748_v38 = vadd.f32 %v2747_v18, %v2729_v1  ;;  %v2696_v50 = vadd.f32 %v2695_v21, %v2677_v47  ;;  %v2752_v2 = vpop.f32.mrf.mxu0 }
 0x717   :  { %v2757_v40 = vadd.f32 %v2748_v38, %v4247_v59  ;;  %v2660_v59 = vadd.f32 %v2659_v43, %v2641_v34 }
 0x718   :  { %v2711_v28 = vpop.f32.mrf.mxu2 }
 0x719   :  { %v2712_v27 = vadd.f32 %v2711_v28, %v2693_v62  ;;  %v2730_v36 = vpop.f32.mrf.mxu3  ;;  %v2761_v39 = vsel %vm162_vm3, %v2757_v40, 0.0  ;;  %v2679_v4 = vadd.f32 %v2678_v6, %v2660_v59 }
 0x71a   :  { %2762 = vadd.xlane.f32.xlu2 %v2761_v39 }
 0x71b   :  { %v2731_v44 = vadd.f32 %v2730_v36, %v2712_v27 }
 0x71c   :  { %v2697_v57 = vpop.f32.mrf.mxu1 }
 0x71d   :  { %v2750_v25 = vadd.f32 %v2749_v46, %v2731_v44  ;;  %v2698_v61 = vadd.f32 %v2697_v57, %v2679_v4  ;;  %v2754_v11 = vpop.f32.mrf.mxu0  ;;  %v4861_v44 = vld [vmem:[%s4926_s14] ss:$0 sm:$0xff] }
 0x71f   :  { %v2758_v52 = vadd.f32 %v2750_v25, %v4249_v60 }
 0x720   :  { %v2714_v53 = vpop.f32.mrf.mxu2 }
 0x721   :  { %v2715_v55 = vadd.f32 %v2714_v53, %v2696_v50  ;;  %v2733_v56 = vpop.f32.mrf.mxu3  ;;  %v2764_v22 = vsel %vm162_vm3, %v2758_v52, 0.0  ;;  %v4866_v50 = vld [vmem:[%s4927_s15] ss:$0 sm:$0xff] }
 0x722   :  { %2765 = vadd.xlane.f32.xlu0 %v2764_v22 }
 0x723   :  { %v2734_v3 = vadd.f32 %v2733_v56, %v2715_v55 }
 0x725   :  { %v2753_v5 = vadd.f32 %v2752_v2, %v2734_v3 }
 0x727   :  { %v2759_v63 = vadd.f32 %v2753_v5, %v4265_v15 }
 0x728   :  { %v2716_v58 = vpop.f32.mrf.mxu2 }
 0x729   :  { %v2717_v0 = vadd.f32 %v2716_v58, %v2698_v61  ;;  %v2767_v51 = vsel %vm162_vm3, %v2759_v63, 0.0  ;;  %v2735_v60 = vpop.f32.mrf.mxu3 }
 0x72a   :  { %2768 = vadd.xlane.f32.xlu1 %v2767_v51 }
 0x72b   :  { %v2736_v8 = vadd.f32 %v2735_v60, %v2717_v0 }
 0x72d   :  { %v2755_v12 = vadd.f32 %v2754_v11, %v2736_v8 }
 0x72f   :  { %v2760_v13 = vadd.f32 %v2755_v12, %v4267_v16 }
 0x731   :  { %v2770_v14 = vsel %vm162_vm3, %v2760_v13, 0.0 }
 0x732   :  { %2771 = vadd.xlane.f32.xlu2 %v2770_v14 }
 0x78d   :  { %v2763_v42 = vpop.xlane.xlu2 %2762 }
 0x78e   :  { %v2773_v6 = vmul.f32 0.125, %v2763_v42 }
 0x790   :  { %v2777_v49 = vsub.f32 %v2757_v40, %v2773_v6 }
 0x792   :  { %v2781_v43 = vmul.f32 %v2777_v49, %v2777_v49 }
 0x794   :  { %v2785_v15 = vsel %vm162_vm3, %v2781_v43, 0.0 }
 0x795   :  { %v2766_v19 = vpop.xlane.xlu0 %2765  ;;  %2786 = vadd.xlane.f32.xlu0 %v2785_v15 }
 0x796   :  { %v2774_v20 = vmul.f32 0.125, %v2766_v19 }
 0x798   :  { %v4843_v7 = vsub.f32 %v2758_v52, %v2774_v20  ;;  %v3890_v52 = vld [vmem:[%s4913_s1] sm:$0xff]  ;;  %s3919_s1 = smov [#allocation2]  }
 0x799   :  { %v4871_v53 = vsub.f32 1.0, %v3890_v52  ;;  %s3110_s14 = sshll.u32 %s3919_s1, 4  ;;  %s3111_s14 = int_to_ptr.vmem [resolvable:$true] %s3110_s14 }
 0x79a   :  { %v2782_v10 = vmul.f32 %v4843_v7, %v4843_v7 }
 0x79b   :  { %v2877_v43 = vrot.slane %v4871_v53, 3 }
 0x79c   :  { %v2788_v18 = vsel %vm162_vm3, %v2782_v10, 0.0 }
 0x79d   :  { %v2769_v16 = vpop.xlane.xlu1 %2768  ;;  %2789 = vadd.xlane.f32.xlu1 %v2788_v18 }
 0x79e   :  { %v2775_v54 = vmul.f32 0.125, %v2769_v16 }
 0x7a0   :  { %v4848_v17 = vsub.f32 %v2759_v63, %v2775_v54  ;;  %v2875_v63 = vrot.slane %v4871_v53, 1  ;;  %v2878_v54 = vrot.slane %v4871_v53, 4 }
 0x7a2   :  { %v2783_v9 = vmul.f32 %v4848_v17, %v4848_v17 }
 0x7a4   :  { %v2791_v24 = vsel %vm162_vm3, %v2783_v9, 0.0 }
 0x7a5   :  { %2792 = vadd.xlane.f32.xlu2 %v2791_v24  ;;  %v2772_v29 = vpop.xlane.xlu2 %2771 }
 0x7a6   :  { %v2776_v33 = vmul.f32 0.125, %v2772_v29  ;;  %v2879_v29 = vrot.slane %v4871_v53, 5 }
 0x7a8   :  { %v4853_v45 = vsub.f32 %v2760_v13, %v2776_v33  ;;  %v2876_v13 = vrot.slane %v4871_v53, 2 }
 0x7aa   :  { %v2784_v30 = vmul.f32 %v4853_v45, %v4853_v45 }
 0x7ac   :  { %v2794_v32 = vsel %vm162_vm3, %v2784_v30, 0.0 }
 0x7ad   :  { %2795 = vadd.xlane.f32.xlu0 %v2794_v32 }
 0x808   :  { %v2787_v26 = vpop.xlane.xlu0 %2786 }
 0x809   :  { %v2797_v1 = vmul.f32 0.125, %v2787_v26  ;;  %v2880_v26 = vrot.slane %v4871_v53, 6 }
 0x80b   :  { %v2801_v23 = vadd.f32 1e-05, %v2797_v1 }
 0x80d   :  { %3882 = vrsqrt.f32 %v2801_v23  ;;  %vm2811_vm7 = vweird.f32 %v2801_v23 }
 0x810   :  { %v2790_v35 = vpop.xlane.xlu1 %2789 }
 0x811   :  { %v2798_v37 = vmul.f32 0.125, %v2790_v35 }
 0x813   :  { %v3883_v38 = vpop.eup %3882  ;;  %v2802_v62 = vadd.f32 1e-05, %v2798_v37 }
 0x814   :  { %v2806_v40 = vmul.f32 %v3883_v38, %v2801_v23  ;;  %vm2812_vm5 = vweird.f32 %v3883_v38  ;;  %v2881_v23 = vrot.slane %v4871_v53, 7 }
 0x815   :  { %3884 = vrsqrt.f32 %v2802_v62  ;;  %vm2813_vm8 = vmor %vm2811_vm7, %vm2812_vm5  ;;  %vm2821_vm10 = vweird.f32 %v2802_v62  ;;  %vm3086_vm5 = vcmask 1042434   ;;  %vm3089_vm7 = vcmask 1043459  }
 0x816   :  { %v2807_v46 = vmul.f32 %v3883_v38, %v2806_v40 }
 0x818   :  { %v2808_v28 = vmul.f32 0.5, %v2807_v46  ;;  %v2793_v31 = vpop.xlane.xlu2 %2792 }
 0x819   :  { %v2799_v41 = vmul.f32 0.125, %v2793_v31 }
 0x81a   :  { %v2809_v27 = vsub.f32 1.5, %v2808_v28 }
 0x81b   :  { %v3885_v36 = vpop.eup %3884  ;;  %v2803_v39 = vadd.f32 1e-05, %v2799_v41 }
 0x81c   :  { %v2810_v21 = vmul.f32 %v3883_v38, %v2809_v27  ;;  %v2816_v48 = vmul.f32 %v3885_v36, %v2802_v62  ;;  %vm2822_vm9 = vweird.f32 %v3885_v36 }
 0x81d   :  { %3886 = vrsqrt.f32 %v2803_v39  ;;  %vm2823_vm11 = vmor %vm2821_vm10, %vm2822_vm9  ;;  %vm2831_vm13 = vweird.f32 %v2803_v39  ;;  %vm3101_vm9 = vcmask 1047559  }
 0x81e   :  { %v2814_v34 = vsel %vm2813_vm8, %v3883_v38, %v2810_v21  ;;  %v2817_v47 = vmul.f32 %v3885_v36, %v2816_v48  ;;  %vm3092_vm8 = vcmask 1044484  }
 0x81f   :  { %v2845_v25 = vmul.f32 %v2814_v34, %v2777_v49 }
 0x820   :  { %v2818_v59 = vmul.f32 0.5, %v2817_v47  ;;  %v2796_v55 = vpop.xlane.xlu0 %2795 }
 0x821   :  { %v2853_v56 = vmul.f32 %v4861_v44, %v2845_v25  ;;  %v2800_v22 = vmul.f32 0.125, %v2796_v55 }
 0x822   :  { %v2819_v2 = vsub.f32 1.5, %v2818_v59 }
 0x823   :  { %v3887_v3 = vpop.eup %3886  ;;  %v2804_v57 = vadd.f32 1e-05, %v2800_v22  ;;  %v2861_v4 = vadd.f32 %v4866_v50, %v2853_v56 }
 0x824   :  { %v2820_v5 = vmul.f32 %v3885_v36, %v2819_v2  ;;  %v2826_v61 = vmul.f32 %v3887_v3, %v2803_v39  ;;  %vm2832_vm12 = vweird.f32 %v3887_v3 }
 0x825   :  { %3888 = vrsqrt.f32 %v2804_v57  ;;  %3687 = vmatpush.msk.msra.mxu1 %vm169_vm2, %v2861_v4  ;;  %v2869_v58 = vrot.slane %v2861_v4, 4  ;;  %vm2833_vm14 = vmor %vm2831_vm13, %vm2832_vm12  ;;  %vm2841_vm0 = vweird.f32 %v2804_v57 }
 0x826   :  { %v2824_v0 = vsel %vm2823_vm11, %v3885_v36, %v2820_v5  ;;  %v2827_v51 = vmul.f32 %v3887_v3, %v2826_v61  ;;  %3688 = vmatmul.msk.f32.vlgmr.msra.gmra.mxu1 %vm543_vm6, %v4871_v53 }
 0x827   :  { %v2846_v60 = vmul.f32 %v2824_v0, %v4843_v7  ;;  %3689 = vmatpush.msk.msrb.mxu2 %vm169_vm2, %v2869_v58 }
 0x828   :  { %v2828_v8 = vmul.f32 0.5, %v2827_v51  ;;  %3690 = vmatmul.msk.f32.vlgmr.msrb.gmra.mxu2 %vm543_vm6, %v2875_v63 }
 0x829   :  { %v2854_v11 = vmul.f32 %v4861_v44, %v2846_v60 }
 0x82a   :  { %v2829_v12 = vsub.f32 1.5, %v2828_v8 }
 0x82b   :  { %v3889_v14 = vpop.eup %3888  ;;  %v2862_v42 = vadd.f32 %v4866_v50, %v2854_v11 }
 0x82c   :  { %v2830_v6 = vmul.f32 %v3887_v3, %v2829_v12  ;;  %v2836_v49 = vmul.f32 %v3889_v14, %v2804_v57  ;;  %vm2842_vm15 = vweird.f32 %v3889_v14 }
 0x82d   :  { %3691 = vmatpush.msk.msrb.mxu3 %vm169_vm2, %v2862_v42  ;;  %v2870_v15 = vrot.slane %v2862_v42, 4  ;;  %vm2843_vm1 = vmor %vm2841_vm0, %vm2842_vm15 }
 0x82e   :  { %v2834_v19 = vsel %vm2833_vm14, %v3887_v3, %v2830_v6  ;;  %v2837_v20 = vmul.f32 %v3889_v14, %v2836_v49  ;;  %3692 = vmatmul.msk.f32.vlgmr.msrb.gmra.mxu3 %vm543_vm6, %v2876_v13 }
 0x82f   :  { %v2847_v7 = vmul.f32 %v2834_v19, %v4848_v17  ;;  %3693 = vmatpush.msk.msrb.mxu1 %vm169_vm2, %v2870_v15 }
 0x830   :  { %v2838_v10 = vmul.f32 0.5, %v2837_v20  ;;  %3694 = vmatmul.msk.f32.vlgmr.msrb.gmra.mxu1 %vm543_vm6, %v2877_v43 }
 0x831   :  { %v2855_v18 = vmul.f32 %v4861_v44, %v2847_v7 }
 0x832   :  { %v2839_v16 = vsub.f32 1.5, %v2838_v10 }
 0x833   :  { %v2863_v9 = vadd.f32 %v4866_v50, %v2855_v18 }
 0x834   :  { %v2840_v24 = vmul.f32 %v3889_v14, %v2839_v16 }
 0x835   :  { %3695 = vmatpush.msk.msra.mxu2 %vm169_vm2, %v2863_v9  ;;  %v2871_v17 = vrot.slane %v2863_v9, 4 }
 0x836   :  { %v2844_v33 = vsel %vm2843_vm1, %v3889_v14, %v2840_v24  ;;  %3696 = vmatmul.msk.f32.vlgmr.msra.gmra.mxu2 %vm543_vm6, %v2878_v54 }
 0x837   :  { %v2848_v30 = vmul.f32 %v2844_v33, %v4853_v45  ;;  %3697 = vmatpush.msk.msra.mxu3 %vm169_vm2, %v2871_v17 }
 0x838   :  { %3698 = vmatmul.msk.f32.vlgmr.msra.gmra.mxu3 %vm543_vm6, %v2879_v29 }
 0x839   :  { %v2856_v32 = vmul.f32 %v4861_v44, %v2848_v30 }
 0x83b   :  { %v2864_v1 = vadd.f32 %v4866_v50, %v2856_v32 }
 0x83d   :  { %3699 = vmatpush.msk.msra.mxu1 %vm169_vm2, %v2864_v1  ;;  %v2872_v35 = vrot.slane %v2864_v1, 4 }
 0x83e   :  { %3700 = vmatmul.msk.f32.vlgmr.msra.gmra.mxu1 %vm543_vm6, %v2880_v26 }
 0x83f   :  { %3701 = vmatpush.msk.msrb.mxu2 %vm169_vm2, %v2872_v35  ;;  %vm3095_vm2 = vcmask 1045509  }
 0x840   :  { %3702 = vmatmul.msk.f32.vlgmr.msrb.gmra.mxu2 %vm543_vm6, %v2881_v23  ;;  %vm3098_vm6 = vcmask 1046534  }
 0x8a3   :  { %v2903_v45 = vpop.f32.mrf.mxu1 }
 0x8ab   :  { %v2927_v37 = vpop.f32.mrf.mxu2 }
 0x8ac   :  { %v3082_v62 = vrot.slane %v2927_v37, 7 }
 0x8ad   :  { %v2975_v40 = vpop.f32.mrf.mxu1 }
 0x8ae   :  { %v3084_v28 = vsel %vm3083_vm4, %v3082_v62, %v2903_v45  ;;  %v3088_v41 = vrot.slane %v2975_v40, 5 }
 0x8b1   :  { %v2951_v38 = vpop.f32.mrf.mxu3 }
 0x8b2   :  { %v3085_v46 = vrot.slane %v2951_v38, 6 }
 0x8b4   :  { %v3087_v27 = vsel %vm3086_vm5, %v3085_v46, %v3084_v28 }
 0x8b5   :  { %v3090_v21 = vsel %vm3089_vm7, %v3088_v41, %v3087_v27 }
 0x8b9   :  { %v2999_v31 = vpop.f32.mrf.mxu2 }
 0x8ba   :  { %v3091_v36 = vrot.slane %v2999_v31, 4 }
 0x8bb   :  { %v3023_v39 = vpop.f32.mrf.mxu3  ;;  %v3047_v44 = vpop.f32.mrf.mxu1 }
 0x8bc   :  { %v3094_v48 = vrot.slane %v3023_v39, 3  ;;  %v3093_v34 = vsel %vm3092_vm8, %v3091_v36, %v3090_v21  ;;  %v3097_v47 = vrot.slane %v3047_v44, 2 }
 0x8be   :  { %v3096_v25 = vsel %vm3095_vm2, %v3094_v48, %v3093_v34 }
 0x8bf   :  { %v3099_v53 = vsel %vm3098_vm6, %v3097_v47, %v3096_v25 }
 0x8c3   :  { %v3071_v50 = vpop.f32.mrf.mxu2 }
 0x8c4   :  { %v3100_v52 = vrot.slane %v3071_v50, 1 }
 0x8c6   :  { %v3102_v59 = vsel %vm3101_vm9, %v3100_v52, %v3099_v53 }
 0x8c7   :  { %3104 = vst.msk [vmem:[#allocation2] sm:$0xff] %vm162_vm3, %v3102_v59 }
 0x8c8   :  { %3115 = dma.vmem_to_hbm [thread:$0]  %s3111_s14, 128, %s3113_s2, [#allocation3]  }
 0x8c9   :  { %3915 = dma.done.wait [#allocation3], 128  }
 0x8ca   :  { %3916 = vsyncadd [#allocation3], 4294967168 }
 0x8cb   :  { %3120 = vsyncpa [#allocation3], 1 }

</bundles_post_ra>
